<compile_context>
chip_gen: v5e
topology: v5e:2x2
jax: 0.10.0
libtpu: 0.0.40
codegen_flags: <defaults>
</compile_context>

<pallas_src>
import functools

import jax
import jax.numpy as jnp
import numpy as np
from jax.experimental import pallas as pl
from jax.experimental.pallas import tpu as pltpu

_GELU_C = 0.7978845608028654  # sqrt(2/pi)


def _gelu_tanh(x):
    # tanh-form GELU: tanh lowers to the EUP (separate issue slot), so the
    # activation is nearly free vs. the erf polynomial's dependent VALU chain.
    # (nn.GELU() default is the exact erf form; max abs difference ~3e-3,
    # covered by the test tolerance.)
    return 0.5 * x * (1.0 + jnp.tanh(_GELU_C * (x + 0.044715 * x * x * x)))


def _layer_norm(x, gamma, beta, eps=1e-5):
    mean = jnp.mean(x, axis=-1, keepdims=True)
    var = jnp.mean((x - mean) ** 2, axis=-1, keepdims=True)
    return (x - mean) * jax.lax.rsqrt(var + eps) * gamma + beta


def transformer_kernel(x_ref, ln1_g_ref, ln1_b_ref, wq_ref, wk_ref, wv_ref,
                       wo_ref, bo_ref, ln2_g_ref, ln2_b_ref, w1_ref, b1_ref,
                       w2_ref, b2_ref, o_ref, *, heads, dim_head):
    """One grid step = one (batch_block, depth-layer) pair.

    The output block is the residual-stream carry: its BlockSpec returns the
    same block index for every depth step, so it stays resident in VMEM across
    the whole depth axis and is only written back to HBM once per batch block.
    """
    d = pl.program_id(1)                                   # depth axis (last, "arbitrary")

    @pl.when(d == 0)
    def _():                                               # seed residual stream from the input
        o_ref[...] = x_ref[...]

    Bt, N, D = o_ref.shape
    x = o_ref[...].astype(jnp.float32).reshape(Bt * N, D)  # (M, D), M = Bt*N; residual in f32

    # ---- PreNorm + Attention ----
    h = _layer_norm(x, ln1_g_ref[0], ln1_b_ref[0])
    h16 = h.astype(jnp.bfloat16)                           # bf16 MXU operands, f32 accumulate
    # Attention scale is pre-folded into wq (wrapper-side weight transform).
    q = jnp.dot(h16, wq_ref[0], preferred_element_type=jnp.float32)   # (M, inner)
    k = jnp.dot(h16, wk_ref[0], preferred_element_type=jnp.float32)
    v = jnp.dot(h16, wv_ref[0], preferred_element_type=jnp.float32)
    q16 = q.astype(jnp.bfloat16)
    k16 = k.astype(jnp.bfloat16)
    v16 = v.astype(jnp.bfloat16)

    proj = jnp.zeros((Bt * N, D), jnp.float32)
    for hd in range(heads):                                # static unroll over heads (see TODO)
        sl = slice(hd * dim_head, (hd + 1) * dim_head)
        qh = q16[:, sl].reshape(Bt, N, dim_head)           # leading-dim split only (no relayout)
        kh = k16[:, sl].reshape(Bt, N, dim_head)
        vh = v16[:, sl].reshape(Bt, N, dim_head)
        dots = jnp.einsum("bnk,bmk->bnm", qh, kh,
                          preferred_element_type=jnp.float32)           # (Bt, N, N)
        dots = dots - jnp.max(dots, axis=-1, keepdims=True)             # softmax in f32
        e = jnp.exp(dots)
        attn = e * pl.reciprocal(jnp.sum(e, axis=-1, keepdims=True), approx=True)
        oh = jnp.einsum("bnm,bmk->bnk", attn.astype(jnp.bfloat16), vh,
                        preferred_element_type=jnp.float32)             # (Bt, N, dh)
        # concat-free head merge: out @ Wo == sum_h out_h @ Wo[h]
        proj = proj + jnp.dot(oh.reshape(Bt * N, dim_head).astype(jnp.bfloat16),
                              wo_ref[0, hd], preferred_element_type=jnp.float32)
    x = proj + bo_ref[0] + x                               # out-proj bias + residual (f32)

    # ---- PreNorm + FeedForward ----
    h2 = _layer_norm(x, ln2_g_ref[0], ln2_b_ref[0])
    h2 = jnp.dot(h2.astype(jnp.bfloat16), w1_ref[0],
                 preferred_element_type=jnp.float32) + b1_ref[0]
    h2 = _gelu_tanh(h2)
    h2 = jnp.dot(h2.astype(jnp.bfloat16), w2_ref[0],
                 preferred_element_type=jnp.float32) + b2_ref[0]
    x = h2 + x                                             # residual

    o_ref[...] = x.reshape(Bt, N, D).astype(o_ref.dtype)


def transformer_forward(x, layer_params, *, heads, dim_head, batch_block=None):
    """Runs `depth` fused transformer layers; returns (x, None) like the module."""
    B, N, D = x.shape
    depth = len(layer_params)
    inner = heads * dim_head
    scale = dim_head ** -0.5

    if batch_block is None:
        # >=2 steps on the "parallel" batch axis so v7x's two TensorCores both
        # get work; v5e/v6e (1 TC) are unaffected.
        batch_block = B if (B % 2) else max(1, B // 2)
    assert B % batch_block == 0

    # Stack per-layer params along a leading depth axis so a single pallas_call
    # covers all layers; depth-dependent index_maps let the pipeline prefetch
    # layer d+1 weights while layer d computes.
    def stack(i, dtype=jnp.float32):
        return jnp.stack([p[i] for p in layer_params], axis=0).astype(dtype)

    ln1_g, ln1_b = stack(0), stack(1)
    wqkv = stack(2)                                        # (depth, D, 3*inner) f32
    # Split into wq/wk/wv (no 3*inner lane slicing in-kernel), fold the
    # attention scale into the Q weight, and store matmul weights in bf16.
    wq = (wqkv[:, :, 0 * inner:1 * inner] * scale).astype(jnp.bfloat16)
    wk = wqkv[:, :, 1 * inner:2 * inner].astype(jnp.bfloat16)
    wv = wqkv[:, :, 2 * inner:3 * inner].astype(jnp.bfloat16)
    wo = jnp.stack([p[3].reshape(heads, dim_head, D) for p in layer_params],
                   axis=0).astype(jnp.bfloat16)            # (depth, heads, dh, D)
    bo = stack(4)
    ln2_g, ln2_b = stack(5), stack(6)
    w1 = stack(7, jnp.bfloat16)
    b1 = stack(8)
    w2 = stack(9, jnp.bfloat16)
    b2 = stack(10)
    weights = (ln1_g, ln1_b, wq, wk, wv, wo, bo, ln2_g, ln2_b, w1, b1, w2, b2)

    def wspec(w):
        rest = tuple(w.shape[1:])
        return pl.BlockSpec((1,) + rest,
                            lambda b, d, _nd=len(rest): (d,) + (0,) * _nd)

    act_spec = pl.BlockSpec((batch_block, N, D), lambda b, d: (b, 0, 0))

    kernel = functools.partial(transformer_kernel, heads=heads, dim_head=dim_head)

    out = pl.pallas_call(
        kernel,
        out_shape=jax.ShapeDtypeStruct((B, N, D), x.dtype),
        grid=(B // batch_block, depth),                    # depth (carry axis) last
        in_specs=[act_spec] + [wspec(w) for w in weights],
        out_specs=act_spec,                                # same block across depth -> VMEM carry
        input_output_aliases={0: 0},                       # x only seeds the carry at d==0
        compiler_params=pltpu.CompilerParams(
            dimension_semantics=("parallel", "arbitrary"),
            # Explicit scoped-VMEM budget: safe on every generation (v7x has
            # 64 MiB physical; v5e/v6e have 128 MiB).
            vmem_limit_bytes=32 * 1024 * 1024),
    )(x, *weights)
    return out, None


def init_params(key, depth, dim, heads, dim_head, mlp_dim):
    inner = heads * dim_head
    layers = []
    for i in range(depth):
        ks = jax.random.split(jax.random.fold_in(key, i), 7)
        ln1_g = jnp.ones((1, dim), jnp.float32)
        ln1_b = jnp.zeros((1, dim), jnp.float32)
        wqkv = 0.05 * jax.random.normal(ks[0], (dim, 3 * inner), jnp.float32)
        wo = 0.05 * jax.random.normal(ks[1], (inner, dim), jnp.float32)
        bo = 0.05 * jax.random.normal(ks[2], (1, dim), jnp.float32)
        ln2_g = jnp.ones((1, dim), jnp.float32)
        ln2_b = jnp.zeros((1, dim), jnp.float32)
        w1 = 0.05 * jax.random.normal(ks[3], (dim, mlp_dim), jnp.float32)
        b1 = 0.05 * jax.random.normal(ks[4], (1, mlp_dim), jnp.float32)
        w2 = 0.05 * jax.random.normal(ks[5], (mlp_dim, dim), jnp.float32)
        b2 = 0.05 * jax.random.normal(ks[6], (1, dim), jnp.float32)
        layers.append((ln1_g, ln1_b, wqkv, wo, bo, ln2_g, ln2_b, w1, b1, w2, b2))
    return layers


def transformer_reference(x, layer_params, *, heads, dim_head):
    """Pure-JAX f32 reference replicating the PyTorch module (eval, selfatt)."""
    scale = dim_head ** -0.5
    inner = heads * dim_head
    B, N, D = x.shape
    for (ln1_g, ln1_b, wqkv, wo, bo, ln2_g, ln2_b, w1, b1, w2, b2) in layer_params:
        h = _layer_norm(x, ln1_g[0], ln1_b[0])
        qkv = h @ wqkv
        q, k, v = jnp.split(qkv, 3, axis=-1)

        def to_heads(t):
            return t.reshape(B, N, heads, dim_head).transpose(0, 2, 1, 3)

        q, k, v = to_heads(q), to_heads(k), to_heads(v)
        dots = jnp.einsum("bhnd,bhmd->bhnm", q, k) * scale
        attn = jax.nn.softmax(dots, axis=-1)
        out = jnp.einsum("bhnm,bhmd->bhnd", attn, v)
        out = out.transpose(0, 2, 1, 3).reshape(B, N, inner)
        x = out @ wo + bo[0] + x
        h2 = _layer_norm(x, ln2_g[0], ln2_b[0])
        h2 = jax.nn.gelu(h2 @ w1 + b1[0], approximate=False)   # exact-erf GELU like torch
        x = h2 @ w2 + b2[0] + x
    return x


if __name__ == "__main__":
    # Small shapes consistent with Transformer(dim, depth, heads, dim_head, mlp_dim)
    B, N = 2, 8
    dim, depth, heads, dim_head, mlp_dim = 32, 2, 4, 8, 64

    key = jax.random.PRNGKey(0)
    kx, kp = jax.random.split(key)
    x = jax.random.normal(kx, (B, N, dim), jnp.float32)
    params = init_params(kp, depth, dim, heads, dim_head, mlp_dim)

    # Reference computed first (the pallas_call aliases / may donate x's buffer).
    ref = transformer_reference(x, params, heads=heads, dim_head=dim_head)

    out, acts = transformer_forward(x, params, heads=heads, dim_head=dim_head)
    out = jax.block_until_ready(out)

    # Tolerance covers bf16 MXU operands, the EUP approximate reciprocal in the
    # softmax denominator, and the tanh-form GELU vs. the exact-erf reference.
    np.testing.assert_allclose(np.asarray(out), np.asarray(ref), rtol=2e-2, atol=2e-2)

    print("KERNEL_OK")
</pallas_src>

<mosaic_0001>
module attributes {stable_mosaic.version = 11 : i64} {
  func.func @transformer_kernel(%arg0: i32, %arg1: i32, %arg2: memref<1x8x32xf32, #tpu.memory_space<vmem>>, %arg3: memref<1x1x32xf32, #tpu.memory_space<vmem>>, %arg4: memref<1x1x32xf32, #tpu.memory_space<vmem>>, %arg5: memref<1x32x32xbf16, #tpu.memory_space<vmem>>, %arg6: memref<1x32x32xbf16, #tpu.memory_space<vmem>>, %arg7: memref<1x32x32xbf16, #tpu.memory_space<vmem>>, %arg8: memref<1x4x8x32xbf16, #tpu.memory_space<vmem>>, %arg9: memref<1x1x32xf32, #tpu.memory_space<vmem>>, %arg10: memref<1x1x32xf32, #tpu.memory_space<vmem>>, %arg11: memref<1x1x32xf32, #tpu.memory_space<vmem>>, %arg12: memref<1x32x64xbf16, #tpu.memory_space<vmem>>, %arg13: memref<1x1x64xf32, #tpu.memory_space<vmem>>, %arg14: memref<1x64x32xbf16, #tpu.memory_space<vmem>>, %arg15: memref<1x1x32xf32, #tpu.memory_space<vmem>>, %arg16: memref<1x8x32xf32, #tpu.memory_space<vmem>>) attributes {dimension_semantics = [#tpu.dimension_semantics<parallel>, #tpu.dimension_semantics<arbitrary>], iteration_bounds = array<i64: 2, 2>, scalar_prefetch = 0 : i64, scratch_operands = 0 : i64, tpu.core_type = #tpu.core_type<tc>, window_params = [{transform_indices = @transform_0, window_bounds = array<i64: 1, 8, 32>}, {transform_indices = @transform_1, window_bounds = array<i64: 1, 1, 32>}, {transform_indices = @transform_2, window_bounds = array<i64: 1, 1, 32>}, {transform_indices = @transform_3, window_bounds = array<i64: 1, 32, 32>}, {transform_indices = @transform_4, window_bounds = array<i64: 1, 32, 32>}, {transform_indices = @transform_5, window_bounds = array<i64: 1, 32, 32>}, {transform_indices = @transform_6, window_bounds = array<i64: 1, 4, 8, 32>}, {transform_indices = @transform_7, window_bounds = array<i64: 1, 1, 32>}, {transform_indices = @transform_8, window_bounds = array<i64: 1, 1, 32>}, {transform_indices = @transform_9, window_bounds = array<i64: 1, 1, 32>}, {transform_indices = @transform_10, window_bounds = array<i64: 1, 32, 64>}, {transform_indices = @transform_11, window_bounds = array<i64: 1, 1, 64>}, {transform_indices = @transform_12, window_bounds = array<i64: 1, 64, 32>}, {transform_indices = @transform_13, window_bounds = array<i64: 1, 1, 32>}, {transform_indices = @transform_14, window_bounds = array<i64: 1, 8, 32>}]} {
    %c0_i32 = arith.constant 0 : i32
    %0 = arith.cmpi eq, %arg1, %c0_i32 : i32
    %1 = arith.extui %0 : i1 to i32
    %c0_i32_0 = arith.constant 0 : i32
    %2 = arith.cmpi ne, %1, %c0_i32_0 : i32
    scf.if %2 {
      %c0_94 = arith.constant 0 : index
      %c0_95 = arith.constant 0 : index
      %c0_96 = arith.constant 0 : index
      %208 = vector.load %arg2[%c0_94, %c0_95, %c0_96] : memref<1x8x32xf32, #tpu.memory_space<vmem>>, vector<1x8x32xf32>
      %c0_97 = arith.constant 0 : index
      %c0_98 = arith.constant 0 : index
      %c0_99 = arith.constant 0 : index
      %209 = vector.load %arg16[%c0_97, %c0_98, %c0_99] : memref<1x8x32xf32, #tpu.memory_space<vmem>>, vector<1x8x32xf32>
      tpu.vector_store %arg16[%c0_97, %c0_98, %c0_99], %208 {strides = array<i32>} : memref<1x8x32xf32, #tpu.memory_space<vmem>>, vector<1x8x32xf32>,
    } else {
    }
    %c0 = arith.constant 0 : index
    %c0_1 = arith.constant 0 : index
    %c0_2 = arith.constant 0 : index
    %3 = vector.load %arg16[%c0, %c0_1, %c0_2] : memref<1x8x32xf32, #tpu.memory_space<vmem>>, vector<1x8x32xf32>
    %4 = vector.shape_cast %3 : vector<1x8x32xf32> to vector<8x32xf32>
    %c0_3 = arith.constant 0 : index
    %c0_4 = arith.constant 0 : index
    %c0_5 = arith.constant 0 : index
    %5 = vector.load %arg3[%c0_3, %c0_4, %c0_5] : memref<1x1x32xf32, #tpu.memory_space<vmem>>, vector<1x1x32xf32>
    %6 = vector.shape_cast %5 : vector<1x1x32xf32> to vector<1x32xf32>
    %c0_6 = arith.constant 0 : index
    %c0_7 = arith.constant 0 : index
    %c0_8 = arith.constant 0 : index
    %7 = vector.load %arg4[%c0_6, %c0_7, %c0_8] : memref<1x1x32xf32, #tpu.memory_space<vmem>>, vector<1x1x32xf32>
    %8 = vector.shape_cast %7 : vector<1x1x32xf32> to vector<1x32xf32>
    %cst = arith.constant dense<0.000000e+00> : vector<8xf32>
    %9 = vector.multi_reduction <add>, %4, %cst [1] : vector<8x32xf32> to vector<8xf32>
    %10 = vector.shape_cast %9 : vector<8xf32> to vector<8x1xf32>
    %cst_9 = arith.constant 3.200000e+01 : f32
    %11 = vector.broadcast %cst_9 : f32 to vector<8x1xf32>
    %12 = arith.divf %10, %11 : vector<8x1xf32>
    %13 = vector.broadcast %12 : vector<8x1xf32> to vector<8x32xf32>
    %14 = arith.subf %4, %13 : vector<8x32xf32>
    %15 = arith.mulf %14, %14 : vector<8x32xf32>
    %cst_10 = arith.constant dense<0.000000e+00> : vector<8xf32>
    %16 = vector.multi_reduction <add>, %15, %cst_10 [1] : vector<8x32xf32> to vector<8xf32>
    %17 = vector.shape_cast %16 : vector<8xf32> to vector<8x1xf32>
    %cst_11 = arith.constant 3.200000e+01 : f32
    %18 = vector.broadcast %cst_11 : f32 to vector<8x1xf32>
    %19 = arith.divf %17, %18 : vector<8x1xf32>
    %20 = vector.broadcast %12 : vector<8x1xf32> to vector<8x32xf32>
    %21 = arith.subf %4, %20 : vector<8x32xf32>
    %cst_12 = arith.constant 9.99999974E-6 : f32
    %22 = vector.broadcast %cst_12 : f32 to vector<8x1xf32>
    %23 = arith.addf %19, %22 : vector<8x1xf32>
    %24 = math.rsqrt %23 : vector<8x1xf32>
    %25 = vector.broadcast %24 : vector<8x1xf32> to vector<8x32xf32>
    %26 = arith.mulf %21, %25 : vector<8x32xf32>
    %27 = vector.broadcast %6 : vector<1x32xf32> to vector<8x32xf32>
    %28 = arith.mulf %26, %27 : vector<8x32xf32>
    %29 = vector.broadcast %8 : vector<1x32xf32> to vector<8x32xf32>
    %30 = arith.addf %28, %29 : vector<8x32xf32>
    %31 = arith.truncf %30 : vector<8x32xf32> to vector<8x32xbf16>
    %c0_13 = arith.constant 0 : index
    %c0_14 = arith.constant 0 : index
    %c0_15 = arith.constant 0 : index
    %32 = vector.load %arg5[%c0_13, %c0_14, %c0_15] : memref<1x32x32xbf16, #tpu.memory_space<vmem>>, vector<1x32x32xbf16>
    %33 = vector.shape_cast %32 : vector<1x32x32xbf16> to vector<32x32xbf16>
    %cst_16 = arith.constant dense<0.000000e+00> : vector<8x32xf32>
    %34 = tpu.matmul %31, %33, %cst_16 {dimension_numbers = #tpu.dot_dimension_numbers<[1], [0], [0], [1], [0, 0, 1, 1], [], []>} : vector<8x32xbf16>, vector<32x32xbf16>, vector<8x32xf32> -> vector<8x32xf32>
    %c0_17 = arith.constant 0 : index
    %c0_18 = arith.constant 0 : index
    %c0_19 = arith.constant 0 : index
    %35 = vector.load %arg6[%c0_17, %c0_18, %c0_19] : memref<1x32x32xbf16, #tpu.memory_space<vmem>>, vector<1x32x32xbf16>
    %36 = vector.shape_cast %35 : vector<1x32x32xbf16> to vector<32x32xbf16>
    %cst_20 = arith.constant dense<0.000000e+00> : vector<8x32xf32>
    %37 = tpu.matmul %31, %36, %cst_20 {dimension_numbers = #tpu.dot_dimension_numbers<[1], [0], [0], [1], [0, 0, 1, 1], [], []>} : vector<8x32xbf16>, vector<32x32xbf16>, vector<8x32xf32> -> vector<8x32xf32>
    %c0_21 = arith.constant 0 : index
    %c0_22 = arith.constant 0 : index
    %c0_23 = arith.constant 0 : index
    %38 = vector.load %arg7[%c0_21, %c0_22, %c0_23] : memref<1x32x32xbf16, #tpu.memory_space<vmem>>, vector<1x32x32xbf16>
    %39 = vector.shape_cast %38 : vector<1x32x32xbf16> to vector<32x32xbf16>
    %cst_24 = arith.constant dense<0.000000e+00> : vector<8x32xf32>
    %40 = tpu.matmul %31, %39, %cst_24 {dimension_numbers = #tpu.dot_dimension_numbers<[1], [0], [0], [1], [0, 0, 1, 1], [], []>} : vector<8x32xbf16>, vector<32x32xbf16>, vector<8x32xf32> -> vector<8x32xf32>
    %41 = arith.truncf %34 : vector<8x32xf32> to vector<8x32xbf16>
    %42 = arith.truncf %37 : vector<8x32xf32> to vector<8x32xbf16>
    %43 = arith.truncf %40 : vector<8x32xf32> to vector<8x32xbf16>
    %cst_25 = arith.constant 0.000000e+00 : f32
    %44 = vector.broadcast %cst_25 : f32 to vector<8x32xf32>
    %45 = vector.extract_strided_slice %41 {offsets = [0, 0], sizes = [8, 8], strides = [1, 1]} : vector<8x32xbf16> to vector<8x8xbf16>
    %46 = vector.shape_cast %45 : vector<8x8xbf16> to vector<1x8x8xbf16>
    %47 = vector.extract_strided_slice %42 {offsets = [0, 0], sizes = [8, 8], strides = [1, 1]} : vector<8x32xbf16> to vector<8x8xbf16>
    %48 = vector.shape_cast %47 : vector<8x8xbf16> to vector<1x8x8xbf16>
    %49 = vector.extract_strided_slice %43 {offsets = [0, 0], sizes = [8, 8], strides = [1, 1]} : vector<8x32xbf16> to vector<8x8xbf16>
    %50 = vector.shape_cast %49 : vector<8x8xbf16> to vector<1x8x8xbf16>
    "tpu.trace_start"() <{level = 10 : i32, message = "bnk,bmk->bnm"}> : () -> ()
    %cst_26 = arith.constant dense<0.000000e+00> : vector<1x8x8xf32>
    %51 = tpu.matmul %46, %48, %cst_26 {dimension_numbers = #tpu.dot_dimension_numbers<[2], [2], [1], [1], [0, 0, 0, 1, 1, 1], [0], [0]>} : vector<1x8x8xbf16>, vector<1x8x8xbf16>, vector<1x8x8xf32> -> vector<1x8x8xf32>
    "tpu.trace_stop"() : () -> ()
    %cst_27 = arith.constant dense<0xFF800000> : vector<1x8xf32>
    %52 = vector.multi_reduction <maximumf>, %51, %cst_27 [2] : vector<1x8x8xf32> to vector<1x8xf32>
    %53 = vector.shape_cast %52 : vector<1x8xf32> to vector<1x8x1xf32>
    %54 = vector.broadcast %53 : vector<1x8x1xf32> to vector<1x8x8xf32>
    %55 = arith.subf %51, %54 : vector<1x8x8xf32>
    %56 = math.exp %55 : vector<1x8x8xf32>
    %cst_28 = arith.constant dense<0.000000e+00> : vector<1x8xf32>
    %57 = vector.multi_reduction <add>, %56, %cst_28 [2] : vector<1x8x8xf32> to vector<1x8xf32>
    %58 = vector.shape_cast %57 : vector<1x8xf32> to vector<1x8x1xf32>
    %59 = tpu.reciprocal %58 {approx = true} : vector<1x8x1xf32> -> vector<1x8x1xf32>
    %60 = vector.broadcast %59 : vector<1x8x1xf32> to vector<1x8x8xf32>
    %61 = arith.mulf %56, %60 : vector<1x8x8xf32>
    %62 = arith.truncf %61 : vector<1x8x8xf32> to vector<1x8x8xbf16>
    "tpu.trace_start"() <{level = 10 : i32, message = "bnm,bmk->bnk"}> : () -> ()
    %cst_29 = arith.constant dense<0.000000e+00> : vector<1x8x8xf32>
    %63 = tpu.matmul %62, %50, %cst_29 {dimension_numbers = #tpu.dot_dimension_numbers<[2], [1], [1], [2], [0, 0, 0, 1, 1, 2], [0], [0]>} : vector<1x8x8xbf16>, vector<1x8x8xbf16>, vector<1x8x8xf32> -> vector<1x8x8xf32>
    "tpu.trace_stop"() : () -> ()
    %64 = vector.shape_cast %63 : vector<1x8x8xf32> to vector<8x8xf32>
    %65 = arith.truncf %64 : vector<8x8xf32> to vector<8x8xbf16>
    %c0_30 = arith.constant 0 : index
    %c0_31 = arith.constant 0 : index
    %c0_32 = arith.constant 0 : index
    %c0_33 = arith.constant 0 : index
    %66 = vector.load %arg8[%c0_30, %c0_31, %c0_32, %c0_33] : memref<1x4x8x32xbf16, #tpu.memory_space<vmem>>, vector<1x1x8x32xbf16>
    %67 = vector.shape_cast %66 : vector<1x1x8x32xbf16> to vector<8x32xbf16>
    %cst_34 = arith.constant dense<0.000000e+00> : vector<8x32xf32>
    %68 = tpu.matmul %65, %67, %cst_34 {dimension_numbers = #tpu.dot_dimension_numbers<[1], [0], [0], [1], [0, 0, 1, 1], [], []>} : vector<8x8xbf16>, vector<8x32xbf16>, vector<8x32xf32> -> vector<8x32xf32>
    %69 = arith.addf %44, %68 : vector<8x32xf32>
    %70 = vector.extract_strided_slice %41 {offsets = [0, 8], sizes = [8, 8], strides = [1, 1]} : vector<8x32xbf16> to vector<8x8xbf16>
    %71 = vector.shape_cast %70 : vector<8x8xbf16> to vector<1x8x8xbf16>
    %72 = vector.extract_strided_slice %42 {offsets = [0, 8], sizes = [8, 8], strides = [1, 1]} : vector<8x32xbf16> to vector<8x8xbf16>
    %73 = vector.shape_cast %72 : vector<8x8xbf16> to vector<1x8x8xbf16>
    %74 = vector.extract_strided_slice %43 {offsets = [0, 8], sizes = [8, 8], strides = [1, 1]} : vector<8x32xbf16> to vector<8x8xbf16>
    %75 = vector.shape_cast %74 : vector<8x8xbf16> to vector<1x8x8xbf16>
    "tpu.trace_start"() <{level = 10 : i32, message = "bnk,bmk->bnm"}> : () -> ()
    %cst_35 = arith.constant dense<0.000000e+00> : vector<1x8x8xf32>
    %76 = tpu.matmul %71, %73, %cst_35 {dimension_numbers = #tpu.dot_dimension_numbers<[2], [2], [1], [1], [0, 0, 0, 1, 1, 1], [0], [0]>} : vector<1x8x8xbf16>, vector<1x8x8xbf16>, vector<1x8x8xf32> -> vector<1x8x8xf32>
    "tpu.trace_stop"() : () -> ()
    %cst_36 = arith.constant dense<0xFF800000> : vector<1x8xf32>
    %77 = vector.multi_reduction <maximumf>, %76, %cst_36 [2] : vector<1x8x8xf32> to vector<1x8xf32>
    %78 = vector.shape_cast %77 : vector<1x8xf32> to vector<1x8x1xf32>
    %79 = vector.broadcast %78 : vector<1x8x1xf32> to vector<1x8x8xf32>
    %80 = arith.subf %76, %79 : vector<1x8x8xf32>
    %81 = math.exp %80 : vector<1x8x8xf32>
    %cst_37 = arith.constant dense<0.000000e+00> : vector<1x8xf32>
    %82 = vector.multi_reduction <add>, %81, %cst_37 [2] : vector<1x8x8xf32> to vector<1x8xf32>
    %83 = vector.shape_cast %82 : vector<1x8xf32> to vector<1x8x1xf32>
    %84 = tpu.reciprocal %83 {approx = true} : vector<1x8x1xf32> -> vector<1x8x1xf32>
    %85 = vector.broadcast %84 : vector<1x8x1xf32> to vector<1x8x8xf32>
    %86 = arith.mulf %81, %85 : vector<1x8x8xf32>
    %87 = arith.truncf %86 : vector<1x8x8xf32> to vector<1x8x8xbf16>
    "tpu.trace_start"() <{level = 10 : i32, message = "bnm,bmk->bnk"}> : () -> ()
    %cst_38 = arith.constant dense<0.000000e+00> : vector<1x8x8xf32>
    %88 = tpu.matmul %87, %75, %cst_38 {dimension_numbers = #tpu.dot_dimension_numbers<[2], [1], [1], [2], [0, 0, 0, 1, 1, 2], [0], [0]>} : vector<1x8x8xbf16>, vector<1x8x8xbf16>, vector<1x8x8xf32> -> vector<1x8x8xf32>
    "tpu.trace_stop"() : () -> ()
    %89 = vector.shape_cast %88 : vector<1x8x8xf32> to vector<8x8xf32>
    %90 = arith.truncf %89 : vector<8x8xf32> to vector<8x8xbf16>
    %c0_39 = arith.constant 0 : index
    %c1 = arith.constant 1 : index
    %c0_40 = arith.constant 0 : index
    %c0_41 = arith.constant 0 : index
    %91 = vector.load %arg8[%c0_39, %c1, %c0_40, %c0_41] : memref<1x4x8x32xbf16, #tpu.memory_space<vmem>>, vector<1x1x8x32xbf16>
    %92 = vector.shape_cast %91 : vector<1x1x8x32xbf16> to vector<8x32xbf16>
    %cst_42 = arith.constant dense<0.000000e+00> : vector<8x32xf32>
    %93 = tpu.matmul %90, %92, %cst_42 {dimension_numbers = #tpu.dot_dimension_numbers<[1], [0], [0], [1], [0, 0, 1, 1], [], []>} : vector<8x8xbf16>, vector<8x32xbf16>, vector<8x32xf32> -> vector<8x32xf32>
    %94 = arith.addf %69, %93 : vector<8x32xf32>
    %95 = vector.extract_strided_slice %41 {offsets = [0, 16], sizes = [8, 8], strides = [1, 1]} : vector<8x32xbf16> to vector<8x8xbf16>
    %96 = vector.shape_cast %95 : vector<8x8xbf16> to vector<1x8x8xbf16>
    %97 = vector.extract_strided_slice %42 {offsets = [0, 16], sizes = [8, 8], strides = [1, 1]} : vector<8x32xbf16> to vector<8x8xbf16>
    %98 = vector.shape_cast %97 : vector<8x8xbf16> to vector<1x8x8xbf16>
    %99 = vector.extract_strided_slice %43 {offsets = [0, 16], sizes = [8, 8], strides = [1, 1]} : vector<8x32xbf16> to vector<8x8xbf16>
    %100 = vector.shape_cast %99 : vector<8x8xbf16> to vector<1x8x8xbf16>
    "tpu.trace_start"() <{level = 10 : i32, message = "bnk,bmk->bnm"}> : () -> ()
    %cst_43 = arith.constant dense<0.000000e+00> : vector<1x8x8xf32>
    %101 = tpu.matmul %96, %98, %cst_43 {dimension_numbers = #tpu.dot_dimension_numbers<[2], [2], [1], [1], [0, 0, 0, 1, 1, 1], [0], [0]>} : vector<1x8x8xbf16>, vector<1x8x8xbf16>, vector<1x8x8xf32> -> vector<1x8x8xf32>
    "tpu.trace_stop"() : () -> ()
    %cst_44 = arith.constant dense<0xFF800000> : vector<1x8xf32>
    %102 = vector.multi_reduction <maximumf>, %101, %cst_44 [2] : vector<1x8x8xf32> to vector<1x8xf32>
    %103 = vector.shape_cast %102 : vector<1x8xf32> to vector<1x8x1xf32>
    %104 = vector.broadcast %103 : vector<1x8x1xf32> to vector<1x8x8xf32>
    %105 = arith.subf %101, %104 : vector<1x8x8xf32>
    %106 = math.exp %105 : vector<1x8x8xf32>
    %cst_45 = arith.constant dense<0.000000e+00> : vector<1x8xf32>
    %107 = vector.multi_reduction <add>, %106, %cst_45 [2] : vector<1x8x8xf32> to vector<1x8xf32>
    %108 = vector.shape_cast %107 : vector<1x8xf32> to vector<1x8x1xf32>
    %109 = tpu.reciprocal %108 {approx = true} : vector<1x8x1xf32> -> vector<1x8x1xf32>
    %110 = vector.broadcast %109 : vector<1x8x1xf32> to vector<1x8x8xf32>
    %111 = arith.mulf %106, %110 : vector<1x8x8xf32>
    %112 = arith.truncf %111 : vector<1x8x8xf32> to vector<1x8x8xbf16>
    "tpu.trace_start"() <{level = 10 : i32, message = "bnm,bmk->bnk"}> : () -> ()
    %cst_46 = arith.constant dense<0.000000e+00> : vector<1x8x8xf32>
    %113 = tpu.matmul %112, %100, %cst_46 {dimension_numbers = #tpu.dot_dimension_numbers<[2], [1], [1], [2], [0, 0, 0, 1, 1, 2], [0], [0]>} : vector<1x8x8xbf16>, vector<1x8x8xbf16>, vector<1x8x8xf32> -> vector<1x8x8xf32>
    "tpu.trace_stop"() : () -> ()
    %114 = vector.shape_cast %113 : vector<1x8x8xf32> to vector<8x8xf32>
    %115 = arith.truncf %114 : vector<8x8xf32> to vector<8x8xbf16>
    %c0_47 = arith.constant 0 : index
    %c2 = arith.constant 2 : index
    %c0_48 = arith.constant 0 : index
    %c0_49 = arith.constant 0 : index
    %116 = vector.load %arg8[%c0_47, %c2, %c0_48, %c0_49] : memref<1x4x8x32xbf16, #tpu.memory_space<vmem>>, vector<1x1x8x32xbf16>
    %117 = vector.shape_cast %116 : vector<1x1x8x32xbf16> to vector<8x32xbf16>
    %cst_50 = arith.constant dense<0.000000e+00> : vector<8x32xf32>
    %118 = tpu.matmul %115, %117, %cst_50 {dimension_numbers = #tpu.dot_dimension_numbers<[1], [0], [0], [1], [0, 0, 1, 1], [], []>} : vector<8x8xbf16>, vector<8x32xbf16>, vector<8x32xf32> -> vector<8x32xf32>
    %119 = arith.addf %94, %118 : vector<8x32xf32>
    %120 = vector.extract_strided_slice %41 {offsets = [0, 24], sizes = [8, 8], strides = [1, 1]} : vector<8x32xbf16> to vector<8x8xbf16>
    %121 = vector.shape_cast %120 : vector<8x8xbf16> to vector<1x8x8xbf16>
    %122 = vector.extract_strided_slice %42 {offsets = [0, 24], sizes = [8, 8], strides = [1, 1]} : vector<8x32xbf16> to vector<8x8xbf16>
    %123 = vector.shape_cast %122 : vector<8x8xbf16> to vector<1x8x8xbf16>
    %124 = vector.extract_strided_slice %43 {offsets = [0, 24], sizes = [8, 8], strides = [1, 1]} : vector<8x32xbf16> to vector<8x8xbf16>
    %125 = vector.shape_cast %124 : vector<8x8xbf16> to vector<1x8x8xbf16>
    "tpu.trace_start"() <{level = 10 : i32, message = "bnk,bmk->bnm"}> : () -> ()
    %cst_51 = arith.constant dense<0.000000e+00> : vector<1x8x8xf32>
    %126 = tpu.matmul %121, %123, %cst_51 {dimension_numbers = #tpu.dot_dimension_numbers<[2], [2], [1], [1], [0, 0, 0, 1, 1, 1], [0], [0]>} : vector<1x8x8xbf16>, vector<1x8x8xbf16>, vector<1x8x8xf32> -> vector<1x8x8xf32>
    "tpu.trace_stop"() : () -> ()
    %cst_52 = arith.constant dense<0xFF800000> : vector<1x8xf32>
    %127 = vector.multi_reduction <maximumf>, %126, %cst_52 [2] : vector<1x8x8xf32> to vector<1x8xf32>
    %128 = vector.shape_cast %127 : vector<1x8xf32> to vector<1x8x1xf32>
    %129 = vector.broadcast %128 : vector<1x8x1xf32> to vector<1x8x8xf32>
    %130 = arith.subf %126, %129 : vector<1x8x8xf32>
    %131 = math.exp %130 : vector<1x8x8xf32>
    %cst_53 = arith.constant dense<0.000000e+00> : vector<1x8xf32>
    %132 = vector.multi_reduction <add>, %131, %cst_53 [2] : vector<1x8x8xf32> to vector<1x8xf32>
    %133 = vector.shape_cast %132 : vector<1x8xf32> to vector<1x8x1xf32>
    %134 = tpu.reciprocal %133 {approx = true} : vector<1x8x1xf32> -> vector<1x8x1xf32>
    %135 = vector.broadcast %134 : vector<1x8x1xf32> to vector<1x8x8xf32>
    %136 = arith.mulf %131, %135 : vector<1x8x8xf32>
    %137 = arith.truncf %136 : vector<1x8x8xf32> to vector<1x8x8xbf16>
    "tpu.trace_start"() <{level = 10 : i32, message = "bnm,bmk->bnk"}> : () -> ()
    %cst_54 = arith.constant dense<0.000000e+00> : vector<1x8x8xf32>
    %138 = tpu.matmul %137, %125, %cst_54 {dimension_numbers = #tpu.dot_dimension_numbers<[2], [1], [1], [2], [0, 0, 0, 1, 1, 2], [0], [0]>} : vector<1x8x8xbf16>, vector<1x8x8xbf16>, vector<1x8x8xf32> -> vector<1x8x8xf32>
    "tpu.trace_stop"() : () -> ()
    %139 = vector.shape_cast %138 : vector<1x8x8xf32> to vector<8x8xf32>
    %140 = arith.truncf %139 : vector<8x8xf32> to vector<8x8xbf16>
    %c0_55 = arith.constant 0 : index
    %c3 = arith.constant 3 : index
    %c0_56 = arith.constant 0 : index
    %c0_57 = arith.constant 0 : index
    %141 = vector.load %arg8[%c0_55, %c3, %c0_56, %c0_57] : memref<1x4x8x32xbf16, #tpu.memory_space<vmem>>, vector<1x1x8x32xbf16>
    %142 = vector.shape_cast %141 : vector<1x1x8x32xbf16> to vector<8x32xbf16>
    %cst_58 = arith.constant dense<0.000000e+00> : vector<8x32xf32>
    %143 = tpu.matmul %140, %142, %cst_58 {dimension_numbers = #tpu.dot_dimension_numbers<[1], [0], [0], [1], [0, 0, 1, 1], [], []>} : vector<8x8xbf16>, vector<8x32xbf16>, vector<8x32xf32> -> vector<8x32xf32>
    %144 = arith.addf %119, %143 : vector<8x32xf32>
    %c0_59 = arith.constant 0 : index
    %c0_60 = arith.constant 0 : index
    %c0_61 = arith.constant 0 : index
    %145 = vector.load %arg9[%c0_59, %c0_60, %c0_61] : memref<1x1x32xf32, #tpu.memory_space<vmem>>, vector<1x1x32xf32>
    %146 = vector.shape_cast %145 : vector<1x1x32xf32> to vector<1x32xf32>
    %147 = vector.broadcast %146 : vector<1x32xf32> to vector<8x32xf32>
    %148 = arith.addf %144, %147 : vector<8x32xf32>
    %149 = arith.addf %148, %4 : vector<8x32xf32>
    %c0_62 = arith.constant 0 : index
    %c0_63 = arith.constant 0 : index
    %c0_64 = arith.constant 0 : index
    %150 = vector.load %arg10[%c0_62, %c0_63, %c0_64] : memref<1x1x32xf32, #tpu.memory_space<vmem>>, vector<1x1x32xf32>
    %151 = vector.shape_cast %150 : vector<1x1x32xf32> to vector<1x32xf32>
    %c0_65 = arith.constant 0 : index
    %c0_66 = arith.constant 0 : index
    %c0_67 = arith.constant 0 : index
    %152 = vector.load %arg11[%c0_65, %c0_66, %c0_67] : memref<1x1x32xf32, #tpu.memory_space<vmem>>, vector<1x1x32xf32>
    %153 = vector.shape_cast %152 : vector<1x1x32xf32> to vector<1x32xf32>
    %cst_68 = arith.constant dense<0.000000e+00> : vector<8xf32>
    %154 = vector.multi_reduction <add>, %149, %cst_68 [1] : vector<8x32xf32> to vector<8xf32>
    %155 = vector.shape_cast %154 : vector<8xf32> to vector<8x1xf32>
    %cst_69 = arith.constant 3.200000e+01 : f32
    %156 = vector.broadcast %cst_69 : f32 to vector<8x1xf32>
    %157 = arith.divf %155, %156 : vector<8x1xf32>
    %158 = vector.broadcast %157 : vector<8x1xf32> to vector<8x32xf32>
    %159 = arith.subf %149, %158 : vector<8x32xf32>
    %160 = arith.mulf %159, %159 : vector<8x32xf32>
    %cst_70 = arith.constant dense<0.000000e+00> : vector<8xf32>
    %161 = vector.multi_reduction <add>, %160, %cst_70 [1] : vector<8x32xf32> to vector<8xf32>
    %162 = vector.shape_cast %161 : vector<8xf32> to vector<8x1xf32>
    %cst_71 = arith.constant 3.200000e+01 : f32
    %163 = vector.broadcast %cst_71 : f32 to vector<8x1xf32>
    %164 = arith.divf %162, %163 : vector<8x1xf32>
    %165 = vector.broadcast %157 : vector<8x1xf32> to vector<8x32xf32>
    %166 = arith.subf %149, %165 : vector<8x32xf32>
    %cst_72 = arith.constant 9.99999974E-6 : f32
    %167 = vector.broadcast %cst_72 : f32 to vector<8x1xf32>
    %168 = arith.addf %164, %167 : vector<8x1xf32>
    %169 = math.rsqrt %168 : vector<8x1xf32>
    %170 = vector.broadcast %169 : vector<8x1xf32> to vector<8x32xf32>
    %171 = arith.mulf %166, %170 : vector<8x32xf32>
    %172 = vector.broadcast %151 : vector<1x32xf32> to vector<8x32xf32>
    %173 = arith.mulf %171, %172 : vector<8x32xf32>
    %174 = vector.broadcast %153 : vector<1x32xf32> to vector<8x32xf32>
    %175 = arith.addf %173, %174 : vector<8x32xf32>
    %176 = arith.truncf %175 : vector<8x32xf32> to vector<8x32xbf16>
    %c0_73 = arith.constant 0 : index
    %c0_74 = arith.constant 0 : index
    %c0_75 = arith.constant 0 : index
    %177 = vector.load %arg12[%c0_73, %c0_74, %c0_75] : memref<1x32x64xbf16, #tpu.memory_space<vmem>>, vector<1x32x64xbf16>
    %178 = vector.shape_cast %177 : vector<1x32x64xbf16> to vector<32x64xbf16>
    %cst_76 = arith.constant dense<0.000000e+00> : vector<8x64xf32>
    %179 = tpu.matmul %176, %178, %cst_76 {dimension_numbers = #tpu.dot_dimension_numbers<[1], [0], [0], [1], [0, 0, 1, 1], [], []>} : vector<8x32xbf16>, vector<32x64xbf16>, vector<8x64xf32> -> vector<8x64xf32>
    %c0_77 = arith.constant 0 : index
    %c0_78 = arith.constant 0 : index
    %c0_79 = arith.constant 0 : index
    %180 = vector.load %arg13[%c0_77, %c0_78, %c0_79] : memref<1x1x64xf32, #tpu.memory_space<vmem>>, vector<1x1x64xf32>
    %181 = vector.shape_cast %180 : vector<1x1x64xf32> to vector<1x64xf32>
    %182 = vector.broadcast %181 : vector<1x64xf32> to vector<8x64xf32>
    %183 = arith.addf %179, %182 : vector<8x64xf32>
    %cst_80 = arith.constant 5.000000e-01 : f32
    %184 = vector.broadcast %cst_80 : f32 to vector<8x64xf32>
    %185 = arith.mulf %184, %183 : vector<8x64xf32>
    %cst_81 = arith.constant 4.471500e-02 : f32
    %186 = vector.broadcast %cst_81 : f32 to vector<8x64xf32>
    %187 = arith.mulf %186, %183 : vector<8x64xf32>
    %188 = arith.mulf %187, %183 : vector<8x64xf32>
    %189 = arith.mulf %188, %183 : vector<8x64xf32>
    %190 = arith.addf %183, %189 : vector<8x64xf32>
    %cst_82 = arith.constant 0.797884583 : f32
    %191 = vector.broadcast %cst_82 : f32 to vector<8x64xf32>
    %192 = arith.mulf %191, %190 : vector<8x64xf32>
    %193 = math.tanh %192 : vector<8x64xf32>
    %cst_83 = arith.constant 1.000000e+00 : f32
    %194 = vector.broadcast %cst_83 : f32 to vector<8x64xf32>
    %195 = arith.addf %194, %193 : vector<8x64xf32>
    %196 = arith.mulf %185, %195 : vector<8x64xf32>
    %197 = arith.truncf %196 : vector<8x64xf32> to vector<8x64xbf16>
    %c0_84 = arith.constant 0 : index
    %c0_85 = arith.constant 0 : index
    %c0_86 = arith.constant 0 : index
    %198 = vector.load %arg14[%c0_84, %c0_85, %c0_86] : memref<1x64x32xbf16, #tpu.memory_space<vmem>>, vector<1x64x32xbf16>
    %199 = vector.shape_cast %198 : vector<1x64x32xbf16> to vector<64x32xbf16>
    %cst_87 = arith.constant dense<0.000000e+00> : vector<8x32xf32>
    %200 = tpu.matmul %197, %199, %cst_87 {dimension_numbers = #tpu.dot_dimension_numbers<[1], [0], [0], [1], [0, 0, 1, 1], [], []>} : vector<8x64xbf16>, vector<64x32xbf16>, vector<8x32xf32> -> vector<8x32xf32>
    %c0_88 = arith.constant 0 : index
    %c0_89 = arith.constant 0 : index
    %c0_90 = arith.constant 0 : index
    %201 = vector.load %arg15[%c0_88, %c0_89, %c0_90] : memref<1x1x32xf32, #tpu.memory_space<vmem>>, vector<1x1x32xf32>
    %202 = vector.shape_cast %201 : vector<1x1x32xf32> to vector<1x32xf32>
    %203 = vector.broadcast %202 : vector<1x32xf32> to vector<8x32xf32>
    %204 = arith.addf %200, %203 : vector<8x32xf32>
    %205 = arith.addf %204, %149 : vector<8x32xf32>
    %206 = vector.shape_cast %205 : vector<8x32xf32> to vector<1x8x32xf32>
    %c0_91 = arith.constant 0 : index
    %c0_92 = arith.constant 0 : index
    %c0_93 = arith.constant 0 : index
    %207 = vector.load %arg16[%c0_91, %c0_92, %c0_93] : memref<1x8x32xf32, #tpu.memory_space<vmem>>, vector<1x8x32xf32>
    tpu.vector_store %arg16[%c0_91, %c0_92, %c0_93], %206 {strides = array<i32>} : memref<1x8x32xf32, #tpu.memory_space<vmem>>, vector<1x8x32xf32>,
    return
  }
  func.func @transform_0(%arg0: i32, %arg1: i32) -> (i32, i32, i32) {
    %c0_i32 = arith.constant 0 : i32
    %c0_i32_0 = arith.constant 0 : i32
    %c0_i32_1 = arith.constant 0 : i32
    return %arg0, %c0_i32, %c0_i32_0 : i32, i32, i32
  }
  func.func @transform_1(%arg0: i32, %arg1: i32) -> (i32, i32, i32) {
    %c0_i32 = arith.constant 0 : i32
    %c0_i32_0 = arith.constant 0 : i32
    %c0_i32_1 = arith.constant 0 : i32
    return %arg1, %c0_i32, %c0_i32_0 : i32, i32, i32
  }
  func.func @transform_2(%arg0: i32, %arg1: i32) -> (i32, i32, i32) {
    %c0_i32 = arith.constant 0 : i32
    %c0_i32_0 = arith.constant 0 : i32
    %c0_i32_1 = arith.constant 0 : i32
    return %arg1, %c0_i32, %c0_i32_0 : i32, i32, i32
  }
  func.func @transform_3(%arg0: i32, %arg1: i32) -> (i32, i32, i32) {
    %c0_i32 = arith.constant 0 : i32
    %c0_i32_0 = arith.constant 0 : i32
    %c0_i32_1 = arith.constant 0 : i32
    return %arg1, %c0_i32, %c0_i32_0 : i32, i32, i32
  }
  func.func @transform_4(%arg0: i32, %arg1: i32) -> (i32, i32, i32) {
    %c0_i32 = arith.constant 0 : i32
    %c0_i32_0 = arith.constant 0 : i32
    %c0_i32_1 = arith.constant 0 : i32
    return %arg1, %c0_i32, %c0_i32_0 : i32, i32, i32
  }
  func.func @transform_5(%arg0: i32, %arg1: i32) -> (i32, i32, i32) {
    %c0_i32 = arith.constant 0 : i32
    %c0_i32_0 = arith.constant 0 : i32
    %c0_i32_1 = arith.constant 0 : i32
    return %arg1, %c0_i32, %c0_i32_0 : i32, i32, i32
  }
  func.func @transform_6(%arg0: i32, %arg1: i32) -> (i32, i32, i32, i32) {
    %c0_i32 = arith.constant 0 : i32
    %c0_i32_0 = arith.constant 0 : i32
    %c0_i32_1 = arith.constant 0 : i32
    %c0_i32_2 = arith.constant 0 : i32
    return %arg1, %c0_i32, %c0_i32_0, %c0_i32_1 : i32, i32, i32, i32
  }
  func.func @transform_7(%arg0: i32, %arg1: i32) -> (i32, i32, i32) {
    %c0_i32 = arith.constant 0 : i32
    %c0_i32_0 = arith.constant 0 : i32
    %c0_i32_1 = arith.constant 0 : i32
    return %arg1, %c0_i32, %c0_i32_0 : i32, i32, i32
  }
  func.func @transform_8(%arg0: i32, %arg1: i32) -> (i32, i32, i32) {
    %c0_i32 = arith.constant 0 : i32
    %c0_i32_0 = arith.constant 0 : i32
    %c0_i32_1 = arith.constant 0 : i32
    return %arg1, %c0_i32, %c0_i32_0 : i32, i32, i32
  }
  func.func @transform_9(%arg0: i32, %arg1: i32) -> (i32, i32, i32) {
    %c0_i32 = arith.constant 0 : i32
    %c0_i32_0 = arith.constant 0 : i32
    %c0_i32_1 = arith.constant 0 : i32
    return %arg1, %c0_i32, %c0_i32_0 : i32, i32, i32
  }
  func.func @transform_10(%arg0: i32, %arg1: i32) -> (i32, i32, i32) {
    %c0_i32 = arith.constant 0 : i32
    %c0_i32_0 = arith.constant 0 : i32
    %c0_i32_1 = arith.constant 0 : i32
    return %arg1, %c0_i32, %c0_i32_0 : i32, i32, i32
  }
  func.func @transform_11(%arg0: i32, %arg1: i32) -> (i32, i32, i32) {
    %c0_i32 = arith.constant 0 : i32
    %c0_i32_0 = arith.constant 0 : i32
    %c0_i32_1 = arith.constant 0 : i32
    return %arg1, %c0_i32, %c0_i32_0 : i32, i32, i32
  }
  func.func @transform_12(%arg0: i32, %arg1: i32) -> (i32, i32, i32) {
    %c0_i32 = arith.constant 0 : i32
    %c0_i32_0 = arith.constant 0 : i32
    %c0_i32_1 = arith.constant 0 : i32
    return %arg1, %c0_i32, %c0_i32_0 : i32, i32, i32
  }
  func.func @transform_13(%arg0: i32, %arg1: i32) -> (i32, i32, i32) {
    %c0_i32 = arith.constant 0 : i32
    %c0_i32_0 = arith.constant 0 : i32
    %c0_i32_1 = arith.constant 0 : i32
    return %arg1, %c0_i32, %c0_i32_0 : i32, i32, i32
  }
  func.func @transform_14(%arg0: i32, %arg1: i32) -> (i32, i32, i32) {
    %c0_i32 = arith.constant 0 : i32
    %c0_i32_0 = arith.constant 0 : i32
    %c0_i32_1 = arith.constant 0 : i32
    return %arg0, %c0_i32, %c0_i32_0 : i32, i32, i32
  }
}

</mosaic_0001>

<bundles_post_ra>
// kernel: tpu_custom_call.1
= control target key start
LH: loop header
LB: loop body
LE: loop exit
PB: predicated region body
PF: predicated region fallthrough
CT: control target
= control target key end

     0   :  { %s2765_s0 = inlined_call_operand.hbm [shape: f32[2,8,32], index: 0, kind: input, shape index: {}, may-alias: {0,14}]   ;;  %s2766_s1 = inlined_call_operand.vmem [shape: f32[2,1,32], index: 1, kind: input, shape index: {}]   ;;  %s2767_s2 = inlined_call_operand.vmem [shape: f32[2,1,32], index: 2, kind: input, shape index: {}]   ;;  %s2768_s3 = inlined_call_operand.vmem [shape: bf16[2,32,32], index: 3, kind: input, shape index: {}]   ;;  %s2769_s4 = inlined_call_operand.vmem [shape: bf16[2,32,32], index: 4, kind: input, shape index: {}]   ;;  %s2770_s5 = inlined_call_operand.vmem [shape: bf16[2,32,32], index: 5, kind: input, shape index: {}]   ;;  %s2771_s6 = inlined_call_operand.hbm [shape: bf16[2,4,8,32], index: 6, kind: input, shape index: {}]   ;;  %s2772_s7 = inlined_call_operand.vmem [shape: f32[2,1,32], index: 7, kind: input, shape index: {}]   ;;  %s2773_s8 = inlined_call_operand.vmem [shape: f32[2,1,32], index: 8, kind: input, shape index: {}]   ;;  %s2774_s9 = inlined_call_operand.vmem [shape: f32[2,1,32], index: 9, kind: input, shape index: {}]   ;;  %s2775_s10 = inlined_call_operand.hbm [shape: bf16[2,32,64], index: 10, kind: input, shape index: {}]   ;;  %s2776_s11 = inlined_call_operand.hbm [shape: f32[2,1,64], index: 11, kind: input, shape index: {}]   ;;  %s2777_s12 = inlined_call_operand.vmem [shape: bf16[2,64,32], index: 12, kind: input, shape index: {}]   ;;  %s2778_s13 = inlined_call_operand.hbm [shape: f32[2,1,32], index: 13, kind: input, shape index: {}]   ;;  %s2779_s14 = inlined_call_operand.hbm [shape: f32[2,8,32], index: 14, kind: output, shape index: {}, may-alias: {0,14}]  }
   0x1   :  { %2797 = sst [smem:[#allocation31_spill]] %s2765_s0 }
   0x2   :  { %2798 = sst [smem:[#allocation32_spill]] %s2766_s1 }
   0x3   :  { %2799 = sst [smem:[#allocation33_spill]] %s2767_s2 }
   0x4   :  { %2800 = sst [smem:[#allocation34_spill]] %s2768_s3 }
   0x5   :  { %2801 = sst [smem:[#allocation35_spill]] %s2769_s4 }
   0x6   :  { %2802 = sst [smem:[#allocation36_spill]] %s2770_s5 }
   0x7   :  { %2803 = sst [smem:[#allocation37_spill]] %s2771_s6 }
   0x8   :  { %2804 = sst [smem:[#allocation38_spill]] %s2772_s7 }
   0x9   :  { %2805 = sst [smem:[#allocation39_spill]] %s2773_s8 }
   0xa   :  { %2806 = sst [smem:[#allocation40_spill]] %s2774_s9 }
   0xb   :  { %2807 = sst [smem:[#allocation41_spill]] %s2775_s10 }
   0xc   :  { %2808 = sst [smem:[#allocation42_spill]] %s2776_s11 }
   0xd   :  { %2809 = sst [smem:[#allocation43_spill]] %s2777_s12 }
   0xe   :  { %2810 = sst [smem:[#allocation44_spill]] %s2778_s13 }
   0xf   :  { %2811 = sst [smem:[#allocation45_spill]] %s2779_s14 }
  0x10   :  { %19 = vsyncpa [#allocation3], 0 }
  0x11   :  { %21 = vsyncpa [#allocation3 + $0x1], 0 }
  0x12   :  { %22 = vsyncpa [#allocation6], 0 }
  0x13   :  { %24 = vsyncpa [#allocation6 + $0x1], 0 }
  0x14   :  { %25 = vsyncpa [#allocation9], 0 }
  0x15   :  { %27 = vsyncpa [#allocation9 + $0x1], 0 }
  0x16   :  { %28 = vsyncpa [#allocation4], 0 }
  0x17   :  { %30 = vsyncpa [#allocation4 + $0x1], 0  ;;  %s2302_s29 = smov 0   ;;  %s2304_s30 = smov 0  }
  0x18   :  { %s2306_s15 = smov 0   ;;  %s2308_s16 = smov 0  }
  0x19   :  { %s2310_s17 = smov 0   ;;  %s2312_s18 = smov 0  }
  0x1a   :  { %s2314_s19 = smov 0   ;;  %s2316_s20 = smov 0  }
  0x1b   :  { %s2318_s21 = smov 0   ;;  %s2320_s22 = smov 0  }
  0x1c   :  { %s2322_s23 = smov 0  }
  0x1d LB: > { %2812 = sst [smem:[#allocation16_spill]] %s2183_s30  ;;  %p63_p0 = scmp.eq.s32.totalorder %s2219_s23, 0  ;;  %s2219_s23 = sphi %s2322_s23, %s36_s23   ;;  %s2215_s22 = sphi %s2320_s22, %s2879_s22   ;;  %s2211_s21 = sphi %s2318_s21, %s2878_s21   ;;  %s2207_s20 = sphi %s2316_s20, %s2877_s20   ;;  %s2203_s19 = sphi %s2314_s19, %s2876_s19   ;;  %s2199_s18 = sphi %s2312_s18, %s2875_s18   ;;  %s2195_s17 = sphi %s2310_s17, %s2874_s17   ;;  %s2191_s16 = sphi %s2308_s16, %s2873_s16   ;;  %s2187_s15 = sphi %s2306_s15, %s2872_s15   ;;  %s2183_s30 = sphi %s2304_s30, %s2871_s30   ;;  %s2179_s29 = sphi %s2302_s29, %s2870_s29  }
  0x1e   : > { %2813 = sst [smem:[#allocation17_spill]] %s2187_s15  ;;  %p218_p1 = scmp.ne.s32.totalorder %s2187_s15, %s2183_s30 }
  0x1f   : > { %2814 = sst [smem:[#allocation18_spill]] %s2191_s16  ;;  %p1812_p2 = scmp.lt.s32.totalorder %s2219_s23, 4 }
  0x20   : > { %2815 = sst [smem:[#allocation19_spill]] %s2195_s17  ;;  %p220_p3 = por %p218_p1, %p63_p0 }
  0x21   : > { %2816 = sst [smem:[#allocation20_spill]] %s2199_s18  ;;  %s2366_s26 = sand.u32 1, %s2187_s15  }
  0x22   : > { %2817 = sst [smem:[#allocation21_spill]] %s2203_s19  ;;  %s1762_s27 = sshll.u32 %s2211_s21, 4 }
  0x23   : > { %2818 = sst [smem:[#allocation22_spill]] %s2207_s20  ;;  %s1670_s28 = sshll.u32 %s2366_s26, 4 }
  0x24   : > { %2819 = sst [smem:[#allocation23_spill]] %s2211_s21  ;;  %s515_s8 = scalar_lea.vmem [#allocation5], %s1670_s28 }
  0x25   : > { %2820 = sst [smem:[#allocation24_spill]] %s2215_s22  ;;  %s523_s24 = sshll.u32 %s515_s8, 4  ;;  %s524_s24 = int_to_ptr.vmem [resolvable:$true] %s523_s24 }
  0x26   : > { %s2821_s6 = sld [smem:[#allocation37_spill]]  ;;  %p2375_p4 = pnand %p1812_p2, %p220_p3 }
  0x27   : > { %s2823_s5 = sand.u32 1, %s2219_s23   ;;  %s2781_s14 = smov 64  }
  0x28   : > { %s2381_s4 = scalar_lea.sflag [#allocation6], %s2823_s5  ;;  %s2824_s10 = sld [smem:[#allocation41_spill]] }
  0x29   : > { %s555_s3 = scalar_lea.vmem [#allocation7], %s1670_s28  ;;  %p1676_p5 = scmp.ge.s32.totalorder %s2219_s23, 1 }
  0x2a   : > { %s563_s7 = sshll.u32 %s555_s3, 4  ;;  %p613_p6 = scmp.lt.s32.totalorder %s2219_s23, 5  ;;  %s2392_s7 = int_to_ptr.vmem [resolvable:$true] %s563_s7 }
  0x2b   : > { %s2825_s11 = sld [smem:[#allocation42_spill]]  ;;  %s2827_s20 = sand.u32 1, %s2219_s23  }
  0x2c   : > { %s520_s12 = scalar_lea.hbm %s2821_s6, %s1762_s27  ;;  %p2402_p7 = pnand %p1676_p5, %p613_p6 }
  0x2d   : > { %s521_s9 = sshll.u32 %s520_s12, 4  ;;  %s2782_s12 = smov 4   ;;  %s522_s9 = int_to_ptr.hbm [resolvable:$true] %s521_s9 }
  0x2e   : > { %1798 = dma.hbm_to_vmem [thread:$0]  (!%p2375_p4), %s522_s9, 256, %s524_s24, %s2381_s4, %s2781_s14, %s2781_s14, %s2782_s12  }
  0x2f   : > { %s560_s6 = scalar_lea.hbm %s2824_s10, %s1762_s27  ;;  %s2409_s9 = scalar_lea.sflag [#allocation9], %s2827_s20 }
  0x30   : > { %s561_s5 = sshll.u32 %s560_s6, 4  ;;  %s576_s6 = scalar_lea.vmem [#allocation8], %s2366_s26  ;;  %s2394_s5 = int_to_ptr.hbm [resolvable:$true] %s561_s5 }
  0x31   : > { %s579_s27 = scalar_lea.hbm %s2825_s11, %s2211_s21  ;;  %s583_s8 = sshll.u32 %s576_s6, 4  ;;  %s584_s8 = int_to_ptr.vmem [resolvable:$true] %s583_s8 }
  0x32   : > { %s581_s3 = sshll.u32 %s579_s27, 4  ;;  %s2415_s24 = sadd.s32 4294967295, %s2219_s23   ;;  %s582_s3 = int_to_ptr.hbm [resolvable:$true] %s581_s3 }
  0x33   : > { %1804 = dma.hbm_to_vmem [thread:$0]  (!%p2375_p4), %s582_s3, 16, %s584_s8, %s2409_s9  }
  0x34   : > { %s1665_s27 = sadd.s32 4294967294, %s2219_s23   ;;  %s45_s14 = sadd.s32 1, %s2211_s21 }
  0x35   : > { %p46_p8 = scmp.ge.s32.totalorder %s45_s14, 2  ;;  %s48_s6 = sadd.s32 1, %s2215_s22 }
  0x36   : > { %s55_s12 = sadd.s32 1, %s2199_s18  ;;  %p62_p9 = scmp.ne.s32.totalorder %s2199_s18, %s2195_s17 }
  0x37   : > { %s2881_s14 = smov (%p46_p8, %s45_s14), 0  ;;  %s2883_s6 = smov (!%p46_p8, %s48_s6), %s2215_s22 }
  0x38   : > { %2828 = sst [smem:[#allocation25_spill]] %s2881_s14  ;;  %p2431_p10 = por %p63_p0, %p62_p9 }
  0x39   : > { %p68_p11 = scmp.ne.s32.totalorder %s2195_s17, %s2191_s16  ;;  %p50_p12 = scmp.ge.s32.totalorder %s2883_s6, 2 }
  0x3a   : > { %p69_p13 = scmp.eq.s32.totalorder %s2415_s24, 0  ;;  %s208_s8 = ssub.s32 %s2211_s21, %s2881_s14 }
  0x3b   : > { %p224_p1 = scmp.ne.s32.totalorder %s2183_s30, %s2179_s29  ;;  %s2885_s6 = smov (%p50_p12, %s2883_s6), 0 }
  0x3c   : > { %2830 = sst [smem:[#allocation26_spill]] %s2885_s6  ;;  %p2447_p3 = por %p69_p13, %p68_p11 }
  0x3d   : > { %p209_p0 = scmp.eq.s32.totalorder %s208_s8, 0  ;;  %s52_s10 = ssub.s32 %s2215_s22, %s2885_s6 }
  0x3e   : > { %p2453_p5 = por %p224_p1, %p69_p13  ;;  %p53_p6 = scmp.eq.s32.totalorder %s52_s10, 0 }
  0x3f   : > { %p430_p8 = scmp.eq.s32.totalorder %s2415_s24, 3  ;;  %s2833_s14 = sadd.s32 1, %s2187_s15 }
  0x40   : > { %s2461_s29 = scalar_select %p209_p0, %s2187_s15, %s2833_s14  }
  0x41   : > { %s2464_s2 = scalar_select %p53_p6, %s2199_s18, %s55_s12  }
  0x42   : > { %2834 = sst [smem:[#allocation27_spill]] %s2461_s29  ;;  %p2469_p12 = por %p430_p8, %p62_p9 }
  0x43   : > { %2835 = sst [smem:[#allocation28_spill]] %s2464_s2  ;;  %p436_p13 = scmp.eq.s32.totalorder %s1665_s27, 3 }
  0x44   : > { %s2836_s8 = scalar_select %p2469_p12, 1, 0 }
  0x45   : > { %s456_s10 = sand.u32 1, %s2199_s18   ;;  %s1669_s6 = sshll.u32 %s2215_s22, 3 }
  0x46   : > { %2837 = sst [smem:[#allocation29_spill]] %s2836_s8  ;;  %p2478_p1 = por %p436_p13, %p68_p11 }
  0x47   : > { %s1668_s19 = sshll.u32 %s456_s10, 3  ;;  %s2840_s0 = sld [smem:[#allocation31_spill]] }
  0x48   : > { %s2838_s1 = scalar_select %p2478_p1, 1, 0 }
  0x49   : > { %s460_s15 = scalar_lea.vmem [#allocation2], %s1668_s19  ;;  %p1793_p9 = pnand %p1812_p2, %p2431_p10 }
  0x4a   : > { %2839 = sst [smem:[#allocation30_spill]] %s2838_s1  ;;  %s468_s8 = sshll.u32 %s460_s15, 4  ;;  %s469_s8 = int_to_ptr.vmem [resolvable:$true] %s468_s8 }
  0x4b   : > { %s2841_s27 = smov 4   ;;  %s2842_s22 = smov 64  }
  0x4c   : > { %1801 = dma.hbm_to_vmem [thread:$0]  (!%p2375_p4), %s2394_s5, 256, %s2392_s7, %s2381_s4, %s2842_s22, %s2842_s22, %s2841_s27  }
  0x4d   : > { %s464_s12 = scalar_lea.hbm %s2840_s0, %s1669_s6  ;;  %s457_s18 = scalar_lea.sflag [#allocation3], %s456_s10 }
  0x4e   : > { %s466_s2 = sshll.u32 %s464_s12, 4  ;;  %s2843_s13 = sld [smem:[#allocation44_spill]]  ;;  %s467_s2 = int_to_ptr.hbm [resolvable:$true] %s466_s2 }
  0x4f   : > { %1795 = dma.hbm_to_vmem [thread:$0]  (!%p1793_p9), %s467_s2, 128, %s469_s8, %s457_s18  }
  0x50   : > { %s601_s14 = scalar_lea.vmem [#allocation10], %s2366_s26  ;;  %s2508_s15 = sand.u32 (!%p2402_p7), 1, %s2195_s17  }
  0x51   : > { %s608_s12 = sshll.u32 %s601_s14, 4  ;;  %s2792_s2 = sshll.u32 (!%p2402_p7), %s2508_s15, 3  ;;  %s609_s12 = int_to_ptr.vmem [resolvable:$true] %s608_s12 }
  0x52   : > { %617 = sbr.rel (%p2402_p7) target bundleno = 2270 (0x8de), region = 76  ;;  %s620_s1 = scalar_lea.sflag (!%p2402_p7), [#allocation3], %s2508_s15 }
  0x53   : > { %s2514_s4 = scalar_lea.vmem (!%p2402_p7), [#allocation2], %s2792_s2 }
  0x54   : > { %s604_s6 = scalar_lea.hbm %s2843_s13, %s2211_s21 }
  0x55   : > { %s606_s0 = sshll.u32 %s604_s6, 4  ;;  %s607_s0 = int_to_ptr.hbm [resolvable:$true] %s606_s0 }
  0x56   : > { %1807 = dma.hbm_to_vmem [thread:$0]  (!%p2375_p4), %s607_s0, 16, %s609_s12, %s2409_s9  }
  0x57   : > { %2162 = dma.done.wait (%p2447_p3), %s620_s1, 128  }
  0x58   : > { %2164 = vsyncadd (%p2447_p3), %s620_s1, 4294967168  ;;  %s629_s0 = sand.u32 1, %s2415_s24   ;;  %s2522_s7 = sand.u32 1, %s2183_s30  }
  0x59   : > { %s1678_s18 = sshll.u32 %s2522_s7, 4  ;;  %s630_s19 = scalar_lea.sflag [#allocation6], %s629_s0 }
  0x5a   : > { %s2525_s22 = scalar_lea.vmem [#allocation5], %s1678_s18 }
  0x5b   : > { %2166 = dma.done.wait (%p2453_p5), %s630_s19, 512  }
  0x5c   : > { %2168 = vsyncadd (%p2453_p5), %s630_s19, 4294966784  ;;  %s2531_s25 = scalar_lea.vmem [#allocation7], %s1678_s18  ;;  %s650_s26 = scalar_lea.sflag [#allocation9], %s629_s0 }
  0x5d   : > { %2170 = dma.done.wait (%p2453_p5), %s650_s26, 32  }
  0x5e   : > { %2172 = vsyncadd (%p2453_p5), %s650_s26, 4294967264  ;;  %s2844_s28 = sld [smem:[#allocation21_spill]]  ;;  %s2854_s3 = sshll.u32 %s2508_s15, 3 }
  0x5f   : > { %s2848_s26 = sld [smem:[#allocation34_spill]]  ;;  %s2587_s16 = scalar_lea.vmem [#allocation11], %s2854_s3 }
  0x60   : > { %s2849_s2 = sld [smem:[#allocation35_spill]] }
  0x61   : > { %s2850_s21 = sld [smem:[#allocation36_spill]] }
  0x62   : > { %s2851_s29 = sld [smem:[#allocation39_spill]] }
  0x63   : > { %s2852_s0 = sld [smem:[#allocation40_spill]] }
  0x64   : > { %p760_p2 = scmp.lt.s32.totalorder %s2844_s28, 1  ;;  %s2853_s30 = sld [smem:[#allocation43_spill]] }
  0x65   : > { %p1689_p4 = scmp.ne.s32.totalorder %s2844_s28, 0 }
  0x66   : > { %s2540_s9 = scalar_select %p760_p2, %s2844_s28, 1 }
  0x68   : > { %s1764_s6 = sshll.u32 %s2540_s9, 4  ;;  %s786_s14 = scalar_lea.vmem %s2851_s29, %s2540_s9 }
  0x69   : > { %s2558_s24 = scalar_lea.vmem %s2848_s26, %s1764_s6  ;;  %s2563_s13 = scalar_lea.vmem %s2849_s2, %s1764_s6 }
  0x6a   : > { %s2568_s11 = scalar_lea.vmem %s2850_s21, %s1764_s6  ;;  %s789_s18 = scalar_lea.vmem %s2852_s0, %s2540_s9 }
  0x6b   : > { %s1767_s19 = sshll.u32 %s2540_s9, 5  ;;  %s661_s2 = scalar_lea.vmem [#allocation10], %s2522_s7 }
  0x6c   : > { %s2582_s5 = scalar_lea.vmem %s2853_s30, %s1767_s19  ;;  %799 = sbr.rel (%p1689_p4) target bundleno = 115 (0x73), region = 100 }
  0x71   : > { %v800_v0 = vld [vmem:[%s2514_s4] sm:$0xff]  ;;  %vm801_vm0 = vcmask 261120  }
  0x72   : > { %802 = vst.msk [vmem:[%s2587_s16] sm:$0xff] %vm801_vm0, %v800_v0 }
  0x73 PF: > { %vm806_vm1 = vcmask 261120   ;;  %v2223_v3 = vmov 32.0   ;;  %v1769_v15 = vld [vmem:[%s2558_s24 + $0x8] sm:$0xff]  ;;  %v1768_v18 = vld [vmem:[%s2558_s24] sm:$0xff]  ;;  %s2855_s17 = sld [smem:[#allocation32_spill]]  ;;  %vm938_vm6 = vcmask 64512  }
  0x74   : > { %1915 = vrcp.f32 %v2223_v3  ;;  %v1771_v16 = vld [vmem:[%s2563_s13 + $0x8] sm:$0xff]  ;;  %870 = vmatpush.bf16.msra.mxu0 %v1769_v15  ;;  %v1770_v19 = vld [vmem:[%s2563_s13] sm:$0xff]  ;;  %s2857_s8 = sld [smem:[#allocation33_spill]]  ;;  %s2224_s6 = smov 112   ;;  %vm973_vm7 = vcmask 1043456   ;;  %vm1377_vm11 = vcmask 523264  }
  0x75   : > { %v1773_v17 = vld [vmem:[%s2568_s11 + $0x8] sm:$0xff]  ;;  %899 = vmatpush.bf16.msra.mxu1 %v1771_v16  ;;  %v1772_v20 = vld [vmem:[%s2568_s11] sm:$0xff]  ;;  %s2225_s0 = smov 120   ;;  %s2226_s24 = smov 104  }
  0x76   : > { %928 = vmatpush.bf16.msra.mxu2 %v1773_v17  ;;  %s2859_s10 = sld [smem:[#allocation38_spill]] }
  0x77   : > { %s2864_s3 = sld [smem:[#allocation22_spill]] }
  0x78   : > { %871 = vmatpush.bf16.msra.mxu0 %v1768_v18  ;;  %s2866_s30 = sld [smem:[#allocation45_spill]] }
  0x79   : > { %v2593_v1 = vld [vmem:[%s2587_s16] sm:$0xff]  ;;  %900 = vmatpush.bf16.msra.mxu1 %v1770_v19  ;;  %s2856_s21 = scalar_lea.vmem %s2855_s17, %s2540_s9 }
  0x7a   : > { %v807_v2 = vsel %vm806_vm1, %v2593_v1, 0.0  ;;  %v1916_v4 = vpop.eup %1915  ;;  %929 = vmatpush.bf16.msra.mxu2 %v1772_v20  ;;  %v1908_v30 = vld [vmem:[%s2856_s21] ss:$0 sm:$0xff]  ;;  %s2858_s29 = scalar_lea.vmem %s2857_s8, %s2540_s9  ;;  %s1409_s21 = sshll.u32 %s2587_s16, 4  ;;  %s1410_s21 = int_to_ptr.vmem [resolvable:$true] %s1409_s21 }
  0x7b   : > { %808 = vadd.xlane.f32.xlu0 %v807_v2  ;;  %v811_v5 = vmul.f32 32.0, %v1916_v4  ;;  %vm815_vm2 = vweird.f32 %v1916_v4  ;;  %v1909_v33 = vld [vmem:[%s2858_s29] ss:$0 sm:$0xff]  ;;  %s1397_s8 = scalar_lea.sflag [#allocation4], %s2508_s15 }
  0x7c   : > { %s2860_s27 = scalar_lea.vmem %s2859_s10, %s2540_s9 }
  0x7d   : > { %v812_v6 = vsub.f32 1.0, %v811_v5  ;;  %s1759_s9 = sshll.u32 %s2864_s3, 3 }
  0x7e   : > { %s2867_s4 = smov %s2866_s30  ;;  %s1407_s17 = scalar_lea.hbm %s2866_s30, %s1759_s9 }
  0x7f   : > { %v813_v7 = vmul.f32 %v1916_v4, %v812_v6  ;;  %s1411_s28 = sshll.u32 %s1407_s17, 4  ;;  %s1412_s28 = int_to_ptr.hbm [resolvable:$true] %s1411_s28 }
  0x80   : > { %s2103_s29 = sshra.s32 %s1412_s28, 4  ;;  %s2104_s29 = int_to_ptr.hbm [resolvable:$true] %s2103_s29 }
  0x81   : > { %v814_v8 = vadd.f32 %v1916_v4, %v813_v7  ;;  %p2110_p3 = scmp.lt.s32.totalorder %s2104_s29, %s2867_s4 }
  0x83   : > { %v2597_v9 = vsel %vm815_vm2, %v1916_v4, %v814_v8 }
  0xee   : > { %v809_v10 = vpop.xlane.xlu0 %808 }
  0xef   : > { %v817_v11 = vmul.f32 %v2597_v9, %v809_v10 }
  0xf1   : > { %v818_v12 = vsub.f32 %v2593_v1, %v817_v11 }
  0xf3   : > { %v819_v13 = vmul.f32 %v818_v12, %v818_v12 }
  0xf5   : > { %v820_v14 = vsel %vm806_vm1, %v819_v13, 0.0  ;;  %v991_v13 = vld [vmem:[%s2525_s22] sm:$0xf] }
  0xf6   : > { %821 = vadd.xlane.f32.xlu0 %v820_v14  ;;  %v1083_v14 = vsel %vm973_vm7, %v991_v13, 0 }
 0x169   : > { %v822_v21 = vpop.xlane.xlu0 %821 }
 0x16a   : > { %v823_v22 = vmul.f32 %v822_v21, %v2597_v9 }
 0x16c   : > { %v824_v23 = vadd.f32 1e-05, %v823_v22 }
 0x16e   : > { %1917 = vrsqrt.f32 %v824_v23  ;;  %vm831_vm4 = vweird.f32 %v824_v23 }
 0x174   : > { %v1918_v24 = vpop.eup %1917 }
 0x175   : > { %v826_v25 = vmul.f32 %v1918_v24, %v824_v23  ;;  %vm832_vm3 = vweird.f32 %v1918_v24 }
 0x176   : > { %vm833_vm5 = vmor %vm831_vm4, %vm832_vm3 }
 0x177   : > { %v827_v26 = vmul.f32 %v1918_v24, %v826_v25 }
 0x179   : > { %v828_v27 = vmul.f32 0.5, %v827_v26 }
 0x17b   : > { %v829_v28 = vsub.f32 1.5, %v828_v27 }
 0x17d   : > { %v830_v29 = vmul.f32 %v1918_v24, %v829_v28 }
 0x17f   : > { %v834_v31 = vsel %vm833_vm5, %v1918_v24, %v830_v29 }
 0x180   : > { %v835_v32 = vmul.f32 %v834_v31, %v818_v12 }
 0x182   : > { %v839_v34 = vmul.f32 %v1908_v30, %v835_v32 }
 0x184   : > { %v843_v35 = vadd.f32 %v1909_v33, %v839_v34 }
 0x186   : > { %v844_v36 = vpack.c.bf16 %v843_v35, %v843_v35 }
 0x188   : > { %1698 = vmatmul.msk.bf16.vlgmr.msra.gmra.mxu0 %vm806_vm1, %v844_v36  ;;  %1707 = vmatmul.msk.bf16.vlgmr.msra.gmra.mxu1 %vm806_vm1, %v844_v36 }
 0x189   : > { %1716 = vmatmul.msk.bf16.vlgmr.msra.gmra.mxu2 %vm806_vm1, %v844_v36 }
 0x205   : > { %v873_v37 = vpop.f32.mrf.mxu0  ;;  %v902_v38 = vpop.f32.mrf.mxu1 }
 0x206   : > { %v936_v39 = vpack.c.bf16 %v902_v38, %v902_v38  ;;  %v935_v42 = vpack.c.bf16 %v873_v37, %v873_v37 }
 0x208   : > { %v998_v40 = vunpack.c.l.b16 %v936_v39  ;;  %v943_v41 = vsel %vm938_vm6, %v936_v39, 0  ;;  %v993_v48 = vunpack.c.l.b16 %v935_v42 }
 0x209   : > { %952 = vmatpush.bf16.xpose.msra.mxu3 %v943_v41 }
 0x20a   : > { %v999_v43 = vpack.c.b16 %v998_v40, %v998_v40  ;;  %v994_v50 = vpack.c.b16 %v993_v48, %v993_v48 }
 0x20c   : > { %v931_v44 = vpop.f32.mrf.mxu2  ;;  %1100 = vrot.lane.b32.xlu0 %v999_v43, %s2224_s6  ;;  %1000 = vrot.lane.b32.xlu2 %v999_v43, %s2225_s0 }
 0x20d   : > { %v2625_v45 = vpack.c.bf16 %v931_v44, %v931_v44  ;;  %v875_v46 = vpop.f32.mrf.mxu0  ;;  %v904_v47 = vpop.f32.mrf.mxu1 }
 0x20f   : > { %v975_v49 = vsel %vm973_vm7, %v2625_v45, 0  ;;  %v1034_v27 = vunpack.c.l.b16 %v2625_v45  ;;  %v1721_v45 = vld [vmem:[%s2525_s22 + $0x4] sm:$0xf] }
 0x210   : > { %984 = vmatpush.bf16.msrb.mxu0 %v975_v49  ;;  %1717 = vmatmul.msk.bf16.vlgmr.msra.gmra.mxu3 %vm938_vm6, %v935_v42  ;;  %v1064_v46 = vsel %vm973_vm7, %v1721_v45, 0  ;;  %v1912_v45 = vld [vmem:[%s789_s18] ss:$0 sm:$0xff] }
 0x211   : > { %v1035_v28 = vpack.c.b16 %v1034_v27, %v1034_v27  ;;  %1073 = vmatpush.bf16.msrb.mxu3 %v1064_v46 }
 0x214   : > { %v933_v51 = vpop.f32.mrf.mxu2  ;;  %995 = vrot.lane.b32.xlu2 %v994_v50, %s2225_s0  ;;  %1092 = vmatpush.bf16.msra.mxu0 %v1083_v14 }
 0x21c   : > { %1179 = vrot.lane.b32.xlu2 %v999_v43, %s2226_s24 }
 0x224   : > { %1177 = vrot.lane.b32.xlu2 %v994_v50, %s2226_s24 }
 0x266   : > { %v1001_v52 = vpop.permute.xlu2 %1000 }
 0x267   : > { %v1006_v53 = vsel %vm938_vm6, %v1001_v52, 0 }
 0x268   : > { %1015 = vmatpush.bf16.xpose.msrb.mxu1 %v1006_v53 }
 0x26e   : > { %v996_v54 = vpop.permute.xlu2 %995 }
 0x26f   : > { %1719 = vmatmul.msk.bf16.vlgmr.msrb.gmra.mxu1 %vm938_vm6, %v996_v54 }
 0x276   : > { %v1180_v5 = vpop.permute.xlu2 %1179 }
 0x277   : > { %v1185_v19 = vsel %vm938_vm6, %v1180_v5, 0 }
 0x27e   : > { %v1101_v55 = vpop.permute.xlu0 %1100  ;;  %v1178_v6 = vpop.permute.xlu2 %1177 }
 0x27f   : > { %v1106_v56 = vsel %vm938_vm6, %v1101_v55, 0 }
 0x280   : > { %1115 = vmatpush.bf16.xpose.msra.mxu1 %v1106_v56 }
 0x293   : > { %v954_v57 = vpop.f32.mrf.mxu3 }
 0x294   : > { %v958_v58 = vsel %vm938_vm6, %v954_v57, -inf }
 0x295   : > { %959 = vmax.xlane.f32.xlu1 %v958_v58 }
 0x29b   : > { %v956_v59 = vpop.f32.mrf.mxu3 }
 0x2ec   : > { %v1017_v60 = vpop.f32.mrf.mxu1 }
 0x2ed   : > { %v1021_v61 = vsel %vm938_vm6, %v1017_v60, -inf }
 0x2ee   : > { %1022 = vmax.xlane.f32.xlu2 %v1021_v61  ;;  %v1726_v61 = vld [vmem:[%s2525_s22 + $0x8] sm:$0xf] }
 0x2f4   : > { %v1019_v62 = vpop.f32.mrf.mxu1 }
 0x308   : > { %v960_v63 = vpop.xlane.xlu1 %959 }
 0x309   : > { %v961_v0 = vsub.f32 %v954_v57, %v960_v63  ;;  %v1161_v63 = vsel %vm973_vm7, %v1726_v61, 0 }
 0x30a   : > { %1170 = vmatpush.bf16.msra.mxu3 %v1161_v63 }
 0x30b   : > { %v962_v2 = vmul.f32 1.442695, %v961_v0 }
 0x30d   : > { %1919 = vpow2.f32 %v962_v2 }
 0x313   : > { %v1920_v3 = vpop.eup %1919 }
 0x314   : > { %v964_v4 = vsel %vm938_vm6, %v1920_v3, 0.0 }
 0x315   : > { %965 = vadd.xlane.f32.xlu1 %v964_v4 }
 0x32e   : > { %1098 = vrot.lane.b32.xlu1 %v994_v50, %s2224_s6 }
 0x361   : > { %v1023_v7 = vpop.xlane.xlu2 %1022 }
 0x362   : > { %v1024_v8 = vsub.f32 %v1017_v60, %v1023_v7 }
 0x364   : > { %v1025_v10 = vmul.f32 1.442695, %v1024_v8 }
 0x366   : > { %1921 = vpow2.f32 %v1025_v10 }
 0x36c   : > { %v1922_v11 = vpop.eup %1921 }
 0x36d   : > { %v1027_v12 = vsel %vm938_vm6, %v1922_v11, 0.0 }
 0x36e   : > { %1028 = vadd.xlane.f32.xlu2 %v1027_v12  ;;  %v1730_v12 = vld [vmem:[%s2525_s22 + $0xc] sm:$0xf] }
 0x36f   : > { %v1240_v13 = vsel %vm973_vm7, %v1730_v12, 0 }
 0x388   : > { %v966_v15 = vpop.xlane.xlu1 %965 }
 0x389   : > { %1923 = vrcp.f32 %v966_v15 }
 0x38f   : > { %v1924_v16 = vpop.eup %1923 }
 0x390   : > { %v968_v17 = vmul.f32 %v1924_v16, %v1920_v3 }
 0x392   : > { %v969_v18 = vpack.c.bf16 %v968_v17, %v968_v17 }
 0x394   : > { %1718 = vmatmul.msk.bf16.vlgmr.msrb.gmra.mxu0 %vm938_vm6, %v969_v18 }
 0x395   : > { %1194 = vmatpush.bf16.xpose.msrb.mxu0 %v1185_v19 }
 0x3a0   : > { %v1099_v20 = vpop.permute.xlu1 %1098 }
 0x3a1   : > { %1724 = vmatmul.msk.bf16.vlgmr.msra.gmra.mxu1 %vm938_vm6, %v1099_v20 }
 0x3e1   : > { %v1029_v33 = vpop.xlane.xlu2 %1028 }
 0x411   : > { %v986_v21 = vpop.f32.mrf.mxu0 }
 0x412   : > { %v990_v22 = vpack.c.bf16 %v986_v21, %v986_v21  ;;  %v1910_v21 = vld [vmem:[%s2860_s27] ss:$0 sm:$0xff] }
 0x414   : > { %1723 = vmatmul.msk.bf16.vlgmr.msra.gmra.mxu0 %vm938_vm6, %v990_v22 }
 0x419   : > { %v988_v23 = vpop.f32.mrf.mxu0 }
 0x41e   : > { %v1117_v24 = vpop.f32.mrf.mxu1 }
 0x41f   : > { %v1121_v25 = vsel %vm938_vm6, %v1117_v24, -inf }
 0x420   : > { %1122 = vmax.xlane.f32.xlu0 %v1121_v25 }
 0x424   : > { %1728 = vmatmul.msk.bf16.vlgmr.msrb.gmra.mxu0 %vm938_vm6, %v1178_v6 }
 0x426   : > { %v1119_v26 = vpop.f32.mrf.mxu1 }
 0x434   : > { %1036 = vrot.lane.b32.xlu0 %v1035_v28, %s2225_s0  ;;  %s2109_s0 = scalar_lea.hbm %s2867_s4, 16 }
 0x491   : > { %v2651_v29 = vpop.f32.mrf.mxu0 }
 0x493   : > { %v1123_v30 = vpop.xlane.xlu0 %1122 }
 0x494   : > { %v1124_v31 = vsub.f32 %v1117_v24, %v1123_v30 }
 0x496   : > { %v1125_v32 = vmul.f32 1.442695, %v1124_v31 }
 0x498   : > { %1925 = vpow2.f32 %v1125_v32 }
 0x499   : > { %v1096_v34 = vpop.f32.mrf.mxu0  ;;  %1927 = vrcp.f32 %v1029_v33  ;;  %v1775_v33 = vld [vmem:[%s2531_s25 + $0x8] sm:$0xff] }
 0x49a   : > { %v1774_v34 = vld [vmem:[%s2531_s25] sm:$0xff] }
 0x49e   : > { %v1926_v35 = vpop.eup %1925 }
 0x49f   : > { %v1127_v36 = vsel %vm938_vm6, %v1926_v35, 0.0  ;;  %v1928_v38 = vpop.eup %1927 }
 0x4a0   : > { %1128 = vadd.xlane.f32.xlu2 %v1127_v36  ;;  %v1031_v40 = vmul.f32 %v1928_v38, %v1922_v11 }
 0x4a1   : > { %v1196_v37 = vpop.f32.mrf.mxu0 }
 0x4a2   : > { %v1200_v39 = vsel %vm938_vm6, %v1196_v37, -inf  ;;  %v1032_v44 = vpack.c.bf16 %v1031_v40, %v1031_v40 }
 0x4a3   : > { %1201 = vmax.xlane.f32.xlu1 %v1200_v39 }
 0x4a6   : > { %v1037_v41 = vpop.permute.xlu0 %1036 }
 0x4a7   : > { %v1042_v42 = vsel %vm973_vm7, %v1037_v41, 0 }
 0x4a8   : > { %1051 = vmatpush.bf16.msrb.mxu2 %v1042_v42 }
 0x4a9   : > { %v1198_v43 = vpop.f32.mrf.mxu0 }
 0x4aa   : > { %v1911_v43 = vld [vmem:[%s786_s14] ss:$0 sm:$0xff]  ;;  %s2863_s14 = scalar_lea.vmem [#allocation8], %s2522_s7  ;;  %s2105_s7 = scalar_lea.hbm %s2104_s29, 8 }
 0x4ab   : > { %1720 = vmatmul.msk.bf16.vlgmr.msrb.gmra.mxu2 %vm938_vm6, %v1032_v44  ;;  %p2106_p7 = scmp.ne.s32.totalorder %s2104_s29, %s2105_s7  ;;  %p2111_p0 = scmp.lt.s32.totalorder %s2109_s0, %s2105_s7 }
 0x4ad   : > { %p2107_p10 = pnand %p2106_p7, %p2469_p12  ;;  %p2112_p5 = por %p2111_p0, %p2110_p3 }
 0x4af   : > { %p2108_p11 = pneg %p2107_p10 }
 0x4b1   : > { %p2113_p6 = pnand %p2112_p5, %p2108_p11 }
 0x4bc   : > { %1133 = vrot.lane.b32.xlu1 %v1035_v28, %s2224_s6 }
 0x513   : > { %v1129_v51 = vpop.xlane.xlu2 %1128 }
 0x516   : > { %v1202_v47 = vpop.xlane.xlu1 %1201 }
 0x517   : > { %v1203_v48 = vsub.f32 %v1196_v37, %v1202_v47 }
 0x519   : > { %v1204_v49 = vmul.f32 1.442695, %v1203_v48 }
 0x51b   : > { %1929 = vpow2.f32 %v1204_v49  ;;  %v1779_v49 = vld [vmem:[%s2582_s5 + $0x18] sm:$0xff] }
 0x51c   : > { %1931 = vrcp.f32 %v1129_v51  ;;  %1385 = vmatpush.bf16.msra.mxu0 %v1779_v49  ;;  %v1777_v51 = vld [vmem:[%s2582_s5 + $0x8] sm:$0xff] }
 0x521   : > { %v1930_v50 = vpop.eup %1929 }
 0x522   : > { %v1206_v52 = vsel %vm938_vm6, %v1930_v50, 0.0  ;;  %v1932_v53 = vpop.eup %1931 }
 0x523   : > { %1207 = vadd.xlane.f32.xlu2 %v1206_v52  ;;  %v1131_v54 = vmul.f32 %v1932_v53, %v1926_v35  ;;  %v1776_v52 = vld [vmem:[%s2582_s5] sm:$0xff] }
 0x524   : > { %v1913_v53 = vld [vmem:[%s2863_s14] ss:$0 sm:$0xff] }
 0x525   : > { %v1132_v59 = vpack.c.bf16 %v1131_v54, %v1131_v54 }
 0x52e   : > { %v1053_v55 = vpop.f32.mrf.mxu2  ;;  %v1134_v56 = vpop.permute.xlu1 %1133 }
 0x52f   : > { %v1057_v57 = vpack.c.bf16 %v1053_v55, %v1053_v55  ;;  %v1139_v58 = vsel %vm973_vm7, %v1134_v56, 0 }
 0x530   : > { %1148 = vmatpush.bf16.msra.mxu2 %v1139_v58 }
 0x531   : > { %1722 = vmatmul.msk.bf16.vlgmr.msrb.gmra.mxu3 %vm938_vm6, %v1057_v57 }
 0x532   : > { %1324 = vmatpush.bf16.msrb.mxu3 %v1775_v33 }
 0x533   : > { %1725 = vmatmul.msk.bf16.vlgmr.msra.gmra.mxu2 %vm938_vm6, %v1132_v59 }
 0x534   : > { %1249 = vmatpush.bf16.msrb.mxu2 %v1240_v13 }
 0x536   : > { %v1055_v60 = vpop.f32.mrf.mxu2  ;;  %1325 = vmatpush.bf16.msrb.mxu3 %v1774_v34 }
 0x53b   : > { %1212 = vrot.lane.b32.xlu2 %v1035_v28, %s2226_s24 }
 0x596   : > { %v1208_v62 = vpop.xlane.xlu2 %1207 }
 0x597   : > { %1933 = vrcp.f32 %v1208_v62 }
 0x59d   : > { %v1934_v0 = vpop.eup %1933 }
 0x59e   : > { %v1210_v2 = vmul.f32 %v1934_v0, %v1930_v50  ;;  %v1213_v3 = vpop.permute.xlu2 %1212  ;;  %v1778_v50 = vld [vmem:[%s2582_s5 + $0x10] sm:$0xff] }
 0x59f   : > { %v1218_v4 = vsel %vm973_vm7, %v1213_v3, 0  ;;  %1386 = vmatpush.bf16.msra.mxu0 %v1778_v50 }
 0x5a0   : > { %v1211_v5 = vpack.c.bf16 %v1210_v2, %v1210_v2  ;;  %1227 = vmatpush.bf16.msrb.mxu1 %v1218_v4  ;;  %v1914_v4 = vld [vmem:[%s661_s2] ss:$0 sm:$0xff] }
 0x5a3   : > { %1729 = vmatmul.msk.bf16.vlgmr.msrb.gmra.mxu1 %vm938_vm6, %v1211_v5  ;;  %1387 = vmatpush.bf16.msra.mxu0 %v1777_v51 }
 0x5a7   : > { %1388 = vmatpush.bf16.msra.mxu0 %v1776_v52 }
 0x5b4   : > { %v1075_v6 = vpop.f32.mrf.mxu3 }
 0x5b5   : > { %v1095_v17 = vadd.f32 %v2651_v29, %v1075_v6 }
 0x5b6   : > { %v1150_v7 = vpop.f32.mrf.mxu2 }
 0x5b7   : > { %v1154_v8 = vpack.c.bf16 %v1150_v7, %v1150_v7 }
 0x5b9   : > { %1727 = vmatmul.msk.bf16.vlgmr.msra.gmra.mxu3 %vm938_vm6, %v1154_v8 }
 0x5bc   : > { %v1077_v10 = vpop.f32.mrf.mxu3 }
 0x5be   : > { %v1152_v11 = vpop.f32.mrf.mxu2 }
 0x620   : > { %v1229_v14 = vpop.f32.mrf.mxu1 }
 0x621   : > { %v1233_v15 = vpack.c.bf16 %v1229_v14, %v1229_v14 }
 0x623   : > { %1731 = vmatmul.msk.bf16.vlgmr.msrb.gmra.mxu2 %vm938_vm6, %v1233_v15 }
 0x628   : > { %v1231_v16 = vpop.f32.mrf.mxu1 }
 0x63c   : > { %v1172_v18 = vpop.f32.mrf.mxu3 }
 0x63d   : > { %v1176_v19 = vadd.f32 %v1172_v18, %v1095_v17 }
 0x644   : > { %v1174_v20 = vpop.f32.mrf.mxu3 }
 0x6a6   : > { %v1251_v22 = vpop.f32.mrf.mxu2 }
 0x6a7   : > { %v1255_v23 = vadd.f32 %v1251_v22, %v1176_v19 }
 0x6a9   : > { %v1260_v24 = vadd.f32 %v1910_v21, %v1255_v23 }
 0x6ab   : > { %v2680_v25 = vadd.f32 %v1260_v24, %v2593_v1 }
 0x6ad   : > { %v1264_v26 = vsel %vm806_vm1, %v2680_v25, 0.0 }
 0x6ae   : > { %v1253_v27 = vpop.f32.mrf.mxu2  ;;  %1265 = vadd.xlane.f32.xlu0 %v1264_v26 }
 0x721   : > { %v1266_v28 = vpop.xlane.xlu0 %1265 }
 0x722   : > { %v1267_v29 = vmul.f32 %v1266_v28, %v2597_v9 }
 0x724   : > { %v1268_v30 = vsub.f32 %v2680_v25, %v1267_v29 }
 0x726   : > { %v1269_v31 = vmul.f32 %v1268_v30, %v1268_v30 }
 0x728   : > { %v1270_v32 = vsel %vm806_vm1, %v1269_v31, 0.0 }
 0x729   : > { %1271 = vadd.xlane.f32.xlu1 %v1270_v32 }
 0x79c   : > { %v1272_v1 = vpop.xlane.xlu1 %1271 }
 0x79d   : > { %v1273_v35 = vmul.f32 %v1272_v1, %v2597_v9 }
 0x79f   : > { %v1274_v36 = vadd.f32 1e-05, %v1273_v35 }
 0x7a1   : > { %1935 = vrsqrt.f32 %v1274_v36  ;;  %vm1281_vm9 = vweird.f32 %v1274_v36 }
 0x7a7   : > { %v1936_v37 = vpop.eup %1935 }
 0x7a8   : > { %v1276_v38 = vmul.f32 %v1936_v37, %v1274_v36  ;;  %vm1282_vm8 = vweird.f32 %v1936_v37 }
 0x7a9   : > { %vm1283_vm10 = vmor %vm1281_vm9, %vm1282_vm8 }
 0x7aa   : > { %v1277_v39 = vmul.f32 %v1936_v37, %v1276_v38 }
 0x7ac   : > { %v1278_v40 = vmul.f32 0.5, %v1277_v39 }
 0x7ae   : > { %v1279_v41 = vsub.f32 1.5, %v1278_v40 }
 0x7b0   : > { %v1280_v42 = vmul.f32 %v1936_v37, %v1279_v41 }
 0x7b2   : > { %v1284_v9 = vsel %vm1283_vm10, %v1936_v37, %v1280_v42 }
 0x7b3   : > { %v1285_v44 = vmul.f32 %v1284_v9, %v1268_v30 }
 0x7b5   : > { %v1289_v46 = vmul.f32 %v1911_v43, %v1285_v44 }
 0x7b7   : > { %v1293_v47 = vadd.f32 %v1912_v45, %v1289_v46 }
 0x7b9   : > { %v1294_v48 = vpack.c.bf16 %v1293_v47, %v1293_v47 }
 0x7bb   : > { %1740 = vmatmul.msk.bf16.vlgmr.msrb.gmra.mxu3 %vm806_vm1, %v1294_v48 }
 0x83e   : > { %v1327_v54 = vpop.f32.mrf.mxu3 }
 0x83f   : > { %v1328_v55 = vadd.f32 %v1913_v53, %v1327_v54 }
 0x841   : > { %v1332_v56 = vmul.f32 0.044715, %v1328_v55  ;;  %v1331_v63 = vmul.f32 0.5, %v1328_v55 }
 0x843   : > { %v1333_v57 = vmul.f32 %v1332_v56, %v1328_v55 }
 0x845   : > { %v1334_v58 = vmul.f32 %v1333_v57, %v1328_v55 }
 0x846   : > { %v1329_v59 = vpop.f32.mrf.mxu3 }
 0x847   : > { %v1335_v60 = vadd.f32 %v1334_v58, %v1328_v55 }
 0x849   : > { %v1336_v61 = vmul.f32 0.7978846, %v1335_v60 }
 0x84b   : > { %1937 = vtanh.f32 %v1336_v61 }
 0x851   : > { %v1938_v62 = vpop.eup %1937 }
 0x852   : > { %v1338_v0 = vadd.f32 1.0, %v1938_v62 }
 0x854   : > { %v1339_v2 = vmul.f32 %v1338_v0, %v1331_v63 }
 0x856   : > { %v1340_v3 = vpack.c.bf16 %v1339_v2, %v1339_v2 }
 0x858   : > { %1757 = vmatmul.msk.bf16.vlgmr.msra.gmra.mxu0 %vm1377_vm11, %v1340_v3 }
 0x8d5   : > { %v1390_v5 = vpop.f32.mrf.mxu0 }
 0x8d6   : > { %v1391_v6 = vadd.f32 %v1914_v4, %v1390_v5 }
 0x8d8   : > { %v1394_v7 = vadd.f32 %v1391_v6, %v2680_v25 }
 0x8da   : > { %1395 = vst.msk [vmem:[%s2587_s16] sm:$0xff] %vm806_vm1, %v1394_v7 }
 0x8db   : > { %2116 = shalt.err (!%p2113_p6)
}
 0x8dc   : > { %1790 = dma.vmem_to_hbm [thread:$0]  (%p2469_p12), %s1410_s21, 128, %s1412_s28, %s1397_s8  }
 0x8dd   : > { %v1392_v8 = vpop.f32.mrf.mxu0 }
 0x8de PF: > { %s2868_s16 = sld [smem:[#allocation18_spill]]  ;;  %p1813_p8 = scmp.ge.s32.totalorder %s2219_s23, 2 }
 0x8e0   : > { %p1809_p13 = pnand %p1813_p8, %p2478_p1 }
 0x8e2   : > { %p1810_p9 = pneg %p1809_p13 }
 0x8e4   : > { %s1423_s11 = sand.u32 1, %s2868_s16  }
 0x8e5   : > { %s1424_s10 = scalar_lea.sflag [#allocation4], %s1423_s11 }
 0x8e6   : > { %2174 = dma.done.wait (%p1810_p9), %s1424_s10, 128  }
 0x8e7   : > { %2176 = vsyncadd (%p1810_p9), %s1424_s10, 4294967168  ;;  %s36_s23 = sadd.s32 1, %s2219_s23   ;;  %s2870_s29 = sld [smem:[#allocation16_spill]] }
 0x8e8   : > { %p33_p2 = scmp.ge.s32.totalorder %s36_s23, 6   ;;  %s2871_s30 = sld [smem:[#allocation17_spill]] }
 0x8e9   : > { %s2872_s15 = sld [smem:[#allocation27_spill]] }
 0x8ea   : > { %s2873_s16 = sld [smem:[#allocation19_spill]] }
 0x8eb   : > { %s2874_s17 = sld [smem:[#allocation20_spill]] }
 0x8ec   : > { %s2875_s18 = sld [smem:[#allocation28_spill]]  ;;  %35 = sbr.rel (!%p33_p2) target bundleno = 29 (0x1d), region = 203 }
 0x8ed   : > { %s2876_s19 = sld [smem:[#allocation23_spill]] }
 0x8ee   : > { %s2877_s20 = sld [smem:[#allocation24_spill]] }
 0x8ef   : > { %s2878_s21 = sld [smem:[#allocation25_spill]] }
 0x8f0   : > { %s2879_s22 = sld [smem:[#allocation26_spill]] }
 0x8f1   :  { %1430 = vsyncpa [#allocation3], 1 }
 0x8f2   :  { %1432 = vsyncpa [#allocation3 + $0x1], 1 }
 0x8f3   :  { %1433 = vsyncpa [#allocation6], 1 }
 0x8f4   :  { %1435 = vsyncpa [#allocation6 + $0x1], 1 }
 0x8f5   :  { %1436 = vsyncpa [#allocation9], 1 }
 0x8f6   :  { %1438 = vsyncpa [#allocation9 + $0x1], 1 }
 0x8f7   :  { %1439 = vsyncpa [#allocation4], 1 }
 0x8f8   :  { %1441 = vsyncpa [#allocation4 + $0x1], 1 }

</bundles_post_ra>
